<compile_context>
chip_gen: v7x
topology: tpu7x:2x2x1
jax: 0.10.0
libtpu: 0.0.40
codegen_flags: <defaults>
</compile_context>

<pallas_src>
import functools

import jax
import jax.numpy as jnp
from jax import lax
from jax.experimental import pallas as pl
from jax.experimental.pallas import tpu as pltpu

LANE = 128
_GATE_ORDER = (0, 1, 3, 2)          # PyTorch (i, f, g, o) -> kernel (i, f, o, g)


def _round_up(n, m):
    return ((n + m - 1) // m) * m


# ----------------------------------------------------------------------------
# Kernel
# ----------------------------------------------------------------------------
def lstm_classifier_kernel(x_ref, w_ih_ref, w_hh_ref, b_ref, w_fc_ref, b_fc_ref,
                           out_ref, h_ref, c_ref, xp_ref,
                           *, hidden_pad, t_block, b_tile, out_dim, unroll):
    # x_ref    : (t_block*b_tile, D) bf16, rows ordered (t, b)   [time-major]
    # w_ih_ref : (D, 4*Hp) bf16    w_hh_ref : (Hp, 4*Hp) bf16
    # b_ref    : (1, 4*Hp) f32     (bias_ih + bias_hh, gate order i,f,o,g)
    # w_fc_ref : (Hp, Op) bf16     b_fc_ref : (1, Op) f32
    # out_ref  : (b_tile, Op) f32  lane-dense log-probs (padded lanes junk)
    # h_ref/c_ref : (b_tile, Hp) f32 scratch, persist across time chunks
    # xp_ref   : (t_block, b_tile, 4*Hp) bf16 scratch (hoisted input proj)
    Hp = hidden_pad
    t_idx = pl.program_id(1)
    nt = pl.num_programs(1)

    # --- new batch tile: reset recurrent state --------------------------------
    @pl.when(t_idx == 0)
    def _init():
        h_ref[...] = jnp.zeros_like(h_ref)
        c_ref[...] = jnp.zeros_like(c_ref)

    # --- stage 1: one fused input projection for the whole time chunk ---------
    # Independent of the recurrence -> single large MXU matmul, pipelines
    # freely instead of sitting on the serial h-dependence chain.
    proj = jnp.dot(x_ref[...], w_ih_ref[...],
                   preferred_element_type=jnp.float32)      # (t_block*b_tile, 4Hp)
    # split the (8-aligned) sublane dim time-major and store compactly in bf16
    xp_ref[...] = proj.reshape(t_block, b_tile, 4 * Hp).astype(xp_ref.dtype)

    # --- stage 2: serial recurrence (fori_loop, small unroll) -----------------
    w_hh = w_hh_ref[...]
    # hoisted out of the loop: JAX does not CSE broadcast_in_dim
    bias = jnp.broadcast_to(b_ref[...], (b_tile, 4 * Hp))

    def step(tt, carry):
        h, c = carry
        xp_t = xp_ref[tt].astype(jnp.float32)                # dense (b_tile, 4Hp)
        z = xp_t + bias + jnp.dot(h.astype(w_hh.dtype), w_hh,
                                  preferred_element_type=jnp.float32)
        sig = jax.nn.sigmoid(z[:, :3 * Hp])                  # i, f, o in one EUP op
        i = sig[:, 0 * Hp:1 * Hp]
        f = sig[:, 1 * Hp:2 * Hp]
        o = sig[:, 2 * Hp:3 * Hp]
        g = jnp.tanh(z[:, 3 * Hp:4 * Hp])
        c = f * c + i * g
        h = o * jnp.tanh(c)
        return h, c

    h, c = lax.fori_loop(0, t_block, step, (h_ref[...], c_ref[...]),
                         unroll=unroll)
    h_ref[...] = h
    c_ref[...] = c

    # --- last chunk: fc + log-softmax on the final hidden state ---------------
    @pl.when(t_idx == nt - 1)
    def _final():
        logits = (jnp.dot(h.astype(w_fc_ref.dtype), w_fc_ref[...],
                          preferred_element_type=jnp.float32) + b_fc_ref[...])
        lane = lax.broadcasted_iota(jnp.int32, logits.shape, 1)
        logits = jnp.where(lane < out_dim, logits, jnp.float32(-1e30))
        m = jnp.max(logits, axis=1, keepdims=True)
        shifted = logits - m
        lse = jnp.log(jnp.sum(jnp.exp(shifted), axis=1, keepdims=True))
        out_ref[...] = (shifted - lse).astype(out_ref.dtype)


# ----------------------------------------------------------------------------
# Parameter packing: PyTorch layout -> padded / reordered / bf16 kernel layout
# ----------------------------------------------------------------------------
def pack_params(params, *, compute_dtype=jnp.bfloat16):
    w_ih = params["weight_ih"]          # (4H, D), torch gate order i,f,g,o
    w_hh = params["weight_hh"]          # (4H, H)
    w_fc = params["fc_weight"]          # (O, H)
    fourH, D = w_ih.shape
    H = fourH // 4
    O = w_fc.shape[0]
    Hp = _round_up(H, LANE)
    Op = _round_up(O, LANE)
    # NOTE: per-gate padding to 128 lanes means H that is not a multiple of 128
    # wastes MXU FLOPs / VMEM by 128/H in the recurrence (fine for small tests).

    def pad_gate_cols(w_t):     # (n_in, 4H) torch order -> (n_in, 4*Hp) i,f,o,g
        n_in = w_t.shape[0]
        w4 = w_t.reshape(n_in, 4, H)[:, _GATE_ORDER, :]
        out = jnp.zeros((n_in, 4, Hp), w_t.dtype).at[:, :, :H].set(w4)
        return out.reshape(n_in, 4 * Hp)

    w_ih_p = pad_gate_cols(w_ih.T).astype(compute_dtype)                 # (D, 4Hp)
    w_hh_p = jnp.zeros((Hp, 4 * Hp), jnp.float32)
    w_hh_p = w_hh_p.at[:H, :].set(pad_gate_cols(w_hh.T)).astype(compute_dtype)

    b = (params["bias_ih"] + params["bias_hh"]).reshape(4, H)[_GATE_ORDER, :]
    b_p = jnp.zeros((4, Hp), jnp.float32).at[:, :H].set(b).reshape(1, 4 * Hp)

    w_fc_p = jnp.zeros((Hp, Op), jnp.float32).at[:H, :O].set(w_fc.T)
    w_fc_p = w_fc_p.astype(compute_dtype)                                # (Hp, Op)
    b_fc_p = jnp.zeros((1, Op), jnp.float32).at[0, :O].set(params["fc_bias"])

    meta = dict(hidden_pad=Hp, out=O, out_pad=Op, in_dim=D)
    return (w_ih_p, w_hh_p, b_p, w_fc_p, b_fc_p), meta


# ----------------------------------------------------------------------------
# Tile sizing (VMEM-budgeted; b_tile is the biggest lever, pick it first)
# ----------------------------------------------------------------------------
def _batch_tile_candidates(Bp):            # Bp is a multiple of 8
    # Cap at 128 so large batches keep >= 2 batch blocks ("parallel" axis can
    # shard across v7x's two TensorCores); largest first.
    return [c for c in (128, 64, 32, 16, 8) if c <= Bp and Bp % c == 0] or [Bp]


def _time_chunk_candidates(T):
    # Prefer the whole sequence (fewest grid steps) when it fits, else
    # 8-aligned chunks, largest first.
    cands = [T] if T <= 256 else []
    cands += [c for c in (128, 64, 32, 16, 8) if c < T and T % c == 0]
    return cands or [T]


def _vmem_estimate(b_tile, t_block, D, Hp, Op):
    bf2, f4 = 2, 4
    weights = 2 * ((D * 4 * Hp + Hp * 4 * Hp + Hp * Op) * bf2 + (4 * Hp + Op) * f4)
    x_chunk = 2 * t_block * b_tile * D * bf2          # double-buffered input slab
    xp = t_block * max(b_tile, 16) * 4 * Hp * bf2     # bf16 projection scratch
    state = 2 * b_tile * Hp * f4                      # h, c
    out = 2 * b_tile * Op * f4
    return weights + x_chunk + xp + state + out


def _pick_tiles(Bp, T, D, Hp, Op, budget_bytes=40 * 2 ** 20):
    best = None
    for bt in _batch_tile_candidates(Bp):
        for tb in _time_chunk_candidates(T):
            est = _vmem_estimate(bt, tb, D, Hp, Op)
            if est <= budget_bytes:
                return bt, tb, est
            if best is None or est < best[2]:
                best = (bt, tb, est)
    return best                      # nothing fits the budget: smallest footprint


# ----------------------------------------------------------------------------
# Wrapper
# ----------------------------------------------------------------------------
def lstm_classifier_forward(x, params, *, compute_dtype=jnp.bfloat16, tiles=None):
    """x: (B, T, D) batch-first (like nn.LSTM(batch_first=True)).
    Returns (B, O) log-probabilities."""
    B, T, D = x.shape
    (w_ih_p, w_hh_p, b_p, w_fc_p, b_fc_p), meta = pack_params(
        params, compute_dtype=compute_dtype)
    Hp, Op, O = meta["hidden_pad"], meta["out_pad"], meta["out"]
    assert meta["in_dim"] == D

    # Pad batch to a multiple of 8 so every block / slab is sublane-aligned.
    B_pad = _round_up(max(B, 8), 8)
    x_p = x if B_pad == B else jnp.concatenate(
        [x, jnp.zeros((B_pad - B, T, D), x.dtype)], axis=0)

    if tiles is None:
        b_tile, t_block, est = _pick_tiles(B_pad, T, D, Hp, Op)
    else:
        b_tile, t_block = tiles
        est = _vmem_estimate(b_tile, t_block, D, Hp, Op)
    assert B_pad % b_tile == 0 and T % t_block == 0
    assert b_tile % 8 == 0
    nb, nt = B_pad // b_tile, T // t_block
    # Small unroll bounds vreg live ranges while keeping LLO scheduling visibility.
    unroll = next(u for u in (8, 4, 2, 1) if t_block % u == 0)

    # One fused layout+cast pass over x: (B,T,D) f32 -> (nb, T*b_tile, D) bf16
    # with rows of each slab ordered (t, b).  This is what lets the kernel do a
    # single fused input-projection matmul per chunk and then read it back per
    # timestep as a dense leading-index slab on the serial chain.
    # TODO(synk): if the upstream producer can emit this layout/dtype directly,
    # pass it through and drop this (x-sized, cheap) extra HBM pass.
    x_km = jnp.transpose(x_p.reshape(nb, b_tile, T, D), (0, 2, 1, 3))
    x_km = x_km.reshape(nb, T * b_tile, D).astype(compute_dtype)

    kernel = functools.partial(lstm_classifier_kernel, hidden_pad=Hp,
                               t_block=t_block, b_tile=b_tile, out_dim=O,
                               unroll=unroll)

    # Explicit scoped-VMEM limit: works on v5e/v6e (128 MiB) and v7x (64 MiB)
    # for budgeted tilings; grows (up to 100 MiB) only if nothing fit the budget.
    vmem_limit = int(min(100 * 2 ** 20,
                         max(32 * 2 ** 20, int(est * 1.25) + (2 << 20))))

    out_padded = pl.pallas_call(
        kernel,
        out_shape=jax.ShapeDtypeStruct((B_pad, Op), jnp.float32),
        grid_spec=pltpu.PrefetchScalarGridSpec(
            num_scalar_prefetch=0,
            grid=(nb, nt),
            in_specs=[
                # time-major x slab; leading batch-block dim squeezed away
                pl.BlockSpec((None, t_block * b_tile, D), lambda b, t: (b, t, 0)),
                # TODO(synk): pipeline_mode=pl.Buffered(1) on these constant-index
                # weight specs would halve their VMEM footprint for large Hp.
                pl.BlockSpec((D, 4 * Hp), lambda b, t: (0, 0)),              # w_ih
                pl.BlockSpec((Hp, 4 * Hp), lambda b, t: (0, 0)),             # w_hh
                pl.BlockSpec((1, 4 * Hp), lambda b, t: (0, 0)),              # bias
                pl.BlockSpec((Hp, Op), lambda b, t: (0, 0)),                 # w_fc
                pl.BlockSpec((1, Op), lambda b, t: (0, 0)),                  # b_fc
            ],
            out_specs=pl.BlockSpec((b_tile, Op), lambda b, t: (b, 0)),
            scratch_shapes=[
                pltpu.VMEM((b_tile, Hp), jnp.float32),                       # h
                pltpu.VMEM((b_tile, Hp), jnp.float32),                       # c
                pltpu.VMEM((t_block, b_tile, 4 * Hp), jnp.bfloat16),         # x_proj
            ],
        ),
        compiler_params=pltpu.CompilerParams(
            dimension_semantics=("parallel", "arbitrary"),
            vmem_limit_bytes=vmem_limit),
    )(x_km, w_ih_p, w_hh_p, b_p, w_fc_p, b_fc_p)

    return out_padded[:B, :O]


# ----------------------------------------------------------------------------
# Init (matches PyTorch __init__: xavier_uniform weights, zero biases) + ref
# ----------------------------------------------------------------------------
def init_params(key, input_dim, hidden_dim, output_dim):
    def xavier(k, shape):                 # shape = (fan_out, fan_in)
        fan_out, fan_in = shape
        bound = (6.0 / (fan_in + fan_out)) ** 0.5
        return jax.random.uniform(k, shape, jnp.float32, -bound, bound)

    k1, k2, k3 = jax.random.split(key, 3)
    return {
        "weight_ih": xavier(k1, (4 * hidden_dim, input_dim)),
        "weight_hh": xavier(k2, (4 * hidden_dim, hidden_dim)),
        "bias_ih": jnp.zeros((4 * hidden_dim,), jnp.float32),
        "bias_hh": jnp.zeros((4 * hidden_dim,), jnp.float32),
        "fc_weight": xavier(k3, (output_dim, hidden_dim)),
        "fc_bias": jnp.zeros((output_dim,), jnp.float32),
    }


def lstm_classifier_reference(x, params):
    """Pure-JAX f32 reference mirroring the PyTorch module."""
    B, T, D = x.shape
    H = params["weight_hh"].shape[1]
    w_ih, w_hh = params["weight_ih"].T, params["weight_hh"].T
    b = params["bias_ih"] + params["bias_hh"]

    def step(carry, x_t):
        h, c = carry
        z = x_t @ w_ih + h @ w_hh + b
        i = jax.nn.sigmoid(z[:, 0 * H:1 * H])
        f = jax.nn.sigmoid(z[:, 1 * H:2 * H])
        g = jnp.tanh(z[:, 2 * H:3 * H])
        o = jax.nn.sigmoid(z[:, 3 * H:4 * H])
        c = f * c + i * g
        h = o * jnp.tanh(c)
        return (h, c), None

    h0 = jnp.zeros((B, H), jnp.float32)
    c0 = jnp.zeros((B, H), jnp.float32)
    (h_T, _), _ = lax.scan(step, (h0, c0), jnp.transpose(x, (1, 0, 2)))
    logits = h_T @ params["fc_weight"].T + params["fc_bias"]
    return jax.nn.log_softmax(logits, axis=1)


if __name__ == "__main__":
    key = jax.random.PRNGKey(0)
    k_param, k_x, k2_param, k2_x = jax.random.split(key, 4)

    # --- small config (module-scale smoke test) --------------------------------
    B, T, D, H, O = 2, 8, 16, 32, 4
    params = init_params(k_param, D, H, O)
    x = jax.random.normal(k_x, (B, T, D), jnp.float32)

    out = lstm_classifier_forward(x, params)
    jax.block_until_ready(out)
    assert out.shape == (B, O)
    ref = lstm_classifier_reference(x, params)
    assert jnp.allclose(jnp.exp(out).sum(axis=1), 1.0, atol=1e-3)
    assert jnp.allclose(out, ref, atol=1e-1), float(jnp.max(jnp.abs(out - ref)))

    # --- multi-block config: exercises nb > 1 and the h/c carry across time
    # chunks (nt > 1) via an explicit tile override ------------------------------
    B2, T2, D2, H2, O2 = 16, 64, 16, 32, 5
    params2 = init_params(k2_param, D2, H2, O2)
    x2 = jax.random.normal(k2_x, (B2, T2, D2), jnp.float32)
    out2 = lstm_classifier_forward(x2, params2, tiles=(8, 16))   # nb=2, nt=4
    jax.block_until_ready(out2)
    assert out2.shape == (B2, O2)
    ref2 = lstm_classifier_reference(x2, params2)
    assert jnp.allclose(jnp.exp(out2).sum(axis=1), 1.0, atol=1e-3)
    # slightly looser tolerance: bf16 weight/projection drift over 64 timesteps
    assert jnp.allclose(out2, ref2, atol=2e-1), float(jnp.max(jnp.abs(out2 - ref2)))

    print("KERNEL_OK")
</pallas_src>

<mosaic_0001>
module attributes {stable_mosaic.version = 11 : i64} {
  func.func @lstm_classifier_kernel(%arg0: i32, %arg1: i32, %arg2: memref<1x64x16xbf16, #tpu.memory_space<vmem>>, %arg3: memref<16x512xbf16, #tpu.memory_space<vmem>>, %arg4: memref<128x512xbf16, #tpu.memory_space<vmem>>, %arg5: memref<1x512xf32, #tpu.memory_space<vmem>>, %arg6: memref<128x128xbf16, #tpu.memory_space<vmem>>, %arg7: memref<1x128xf32, #tpu.memory_space<vmem>>, %arg8: memref<8x128xf32, #tpu.memory_space<vmem>>, %arg9: memref<8x128xf32, #tpu.memory_space<vmem>>, %arg10: memref<8x128xf32, #tpu.memory_space<vmem>>, %arg11: memref<8x8x512xbf16, #tpu.memory_space<vmem>>) attributes {dimension_semantics = [#tpu.dimension_semantics<parallel>, #tpu.dimension_semantics<arbitrary>], iteration_bounds = array<i64: 1, 1>, scalar_prefetch = 0 : i64, scratch_operands = 3 : i64, tpu.core_type = #tpu.core_type<tc>, window_params = [{transform_indices = @transform_0, window_bounds = array<i64: 1, 64, 16>}, {pipeline_mode = #tpu.pipeline_mode<synchronous>, transform_indices = @transform_1, window_bounds = array<i64: 16, 512>}, {pipeline_mode = #tpu.pipeline_mode<synchronous>, transform_indices = @transform_2, window_bounds = array<i64: 128, 512>}, {pipeline_mode = #tpu.pipeline_mode<synchronous>, transform_indices = @transform_3, window_bounds = array<i64: 1, 512>}, {pipeline_mode = #tpu.pipeline_mode<synchronous>, transform_indices = @transform_4, window_bounds = array<i64: 128, 128>}, {pipeline_mode = #tpu.pipeline_mode<synchronous>, transform_indices = @transform_5, window_bounds = array<i64: 1, 128>}, {transform_indices = @transform_6, window_bounds = array<i64: 8, 128>}]} {
    %c0_i32 = arith.constant 0 : i32
    %0 = arith.cmpi eq, %arg1, %c0_i32 : i32
    %1 = arith.extui %0 : i1 to i32
    %c0_i32_0 = arith.constant 0 : i32
    %2 = arith.cmpi ne, %1, %c0_i32_0 : i32
    scf.if %2 {
      %cst_55 = arith.constant 0.000000e+00 : f32
      %213 = vector.broadcast %cst_55 : f32 to vector<8x128xf32>
      %c0_56 = arith.constant 0 : index
      %c0_57 = arith.constant 0 : index
      %214 = vector.load %arg9[%c0_56, %c0_57] : memref<8x128xf32, #tpu.memory_space<vmem>>, vector<8x128xf32>
      tpu.vector_store %arg9[%c0_56, %c0_57], %213 {strides = array<i32>} : memref<8x128xf32, #tpu.memory_space<vmem>>, vector<8x128xf32>,
      %cst_58 = arith.constant 0.000000e+00 : f32
      %215 = vector.broadcast %cst_58 : f32 to vector<8x128xf32>
      %c0_59 = arith.constant 0 : index
      %c0_60 = arith.constant 0 : index
      %216 = vector.load %arg10[%c0_59, %c0_60] : memref<8x128xf32, #tpu.memory_space<vmem>>, vector<8x128xf32>
      tpu.vector_store %arg10[%c0_59, %c0_60], %215 {strides = array<i32>} : memref<8x128xf32, #tpu.memory_space<vmem>>, vector<8x128xf32>,
    } else {
    }
    %c0 = arith.constant 0 : index
    %c0_1 = arith.constant 0 : index
    %c0_2 = arith.constant 0 : index
    %3 = vector.load %arg2[%c0, %c0_1, %c0_2] : memref<1x64x16xbf16, #tpu.memory_space<vmem>>, vector<1x64x16xbf16>
    %4 = vector.shape_cast %3 : vector<1x64x16xbf16> to vector<64x16xbf16>
    %c0_3 = arith.constant 0 : index
    %c0_4 = arith.constant 0 : index
    %5 = vector.load %arg3[%c0_3, %c0_4] : memref<16x512xbf16, #tpu.memory_space<vmem>>, vector<16x512xbf16>
    %cst = arith.constant dense<0.000000e+00> : vector<64x512xf32>
    %6 = tpu.matmul %4, %5, %cst {dimension_numbers = #tpu.dot_dimension_numbers<[1], [0], [0], [1], [0, 0, 1, 1], [], []>} : vector<64x16xbf16>, vector<16x512xbf16>, vector<64x512xf32> -> vector<64x512xf32>
    %7 = vector.shape_cast %6 : vector<64x512xf32> to vector<8x8x512xf32>
    %8 = arith.truncf %7 : vector<8x8x512xf32> to vector<8x8x512xbf16>
    %c0_5 = arith.constant 0 : index
    %c0_6 = arith.constant 0 : index
    %c0_7 = arith.constant 0 : index
    %9 = vector.load %arg11[%c0_5, %c0_6, %c0_7] : memref<8x8x512xbf16, #tpu.memory_space<vmem>>, vector<8x8x512xbf16>
    tpu.vector_store %arg11[%c0_5, %c0_6, %c0_7], %8 {strides = array<i32>} : memref<8x8x512xbf16, #tpu.memory_space<vmem>>, vector<8x8x512xbf16>,
    %c0_8 = arith.constant 0 : index
    %c0_9 = arith.constant 0 : index
    %10 = vector.load %arg4[%c0_8, %c0_9] : memref<128x512xbf16, #tpu.memory_space<vmem>>, vector<128x512xbf16>
    %c0_10 = arith.constant 0 : index
    %c0_11 = arith.constant 0 : index
    %11 = vector.load %arg5[%c0_10, %c0_11] : memref<1x512xf32, #tpu.memory_space<vmem>>, vector<1x512xf32>
    %12 = vector.shape_cast %11 : vector<1x512xf32> to vector<1x512xf32>
    %13 = vector.broadcast %12 : vector<1x512xf32> to vector<8x512xf32>
    %c0_12 = arith.constant 0 : index
    %c0_13 = arith.constant 0 : index
    %14 = vector.load %arg9[%c0_12, %c0_13] : memref<8x128xf32, #tpu.memory_space<vmem>>, vector<8x128xf32>
    %c0_14 = arith.constant 0 : index
    %c0_15 = arith.constant 0 : index
    %15 = vector.load %arg10[%c0_14, %c0_15] : memref<8x128xf32, #tpu.memory_space<vmem>>, vector<8x128xf32>
    %c0_i32_16 = arith.constant 0 : i32
    %16 = arith.index_cast %c0_i32_16 : i32 to index
    %c0_17 = arith.constant 0 : index
    %c0_18 = arith.constant 0 : index
    %17 = vector.load %arg11[%16, %c0_17, %c0_18] : memref<8x8x512xbf16, #tpu.memory_space<vmem>>, vector<1x8x512xbf16>
    %18 = vector.shape_cast %17 : vector<1x8x512xbf16> to vector<8x512xbf16>
    %19 = arith.extf %18 : vector<8x512xbf16> to vector<8x512xf32>
    %20 = arith.addf %19, %13 : vector<8x512xf32>
    %21 = arith.truncf %14 : vector<8x128xf32> to vector<8x128xbf16>
    %cst_19 = arith.constant dense<0.000000e+00> : vector<8x512xf32>
    %22 = tpu.matmul %21, %10, %cst_19 {dimension_numbers = #tpu.dot_dimension_numbers<[1], [0], [0], [1], [0, 0, 1, 1], [], []>} : vector<8x128xbf16>, vector<128x512xbf16>, vector<8x512xf32> -> vector<8x512xf32>
    %23 = arith.addf %20, %22 : vector<8x512xf32>
    %24 = vector.extract_strided_slice %23 {offsets = [0, 0], sizes = [8, 384], strides = [1, 1]} : vector<8x512xf32> to vector<8x384xf32>
    %25 = arith.negf %24 : vector<8x384xf32>
    %26 = math.exp %25 : vector<8x384xf32>
    %cst_20 = arith.constant 1.000000e+00 : f32
    %27 = vector.broadcast %cst_20 : f32 to vector<8x384xf32>
    %28 = arith.addf %27, %26 : vector<8x384xf32>
    %29 = arith.divf %27, %28 : vector<8x384xf32>
    %30 = vector.extract_strided_slice %29 {offsets = [0, 0], sizes = [8, 128], strides = [1, 1]} : vector<8x384xf32> to vector<8x128xf32>
    %31 = vector.extract_strided_slice %29 {offsets = [0, 128], sizes = [8, 128], strides = [1, 1]} : vector<8x384xf32> to vector<8x128xf32>
    %32 = vector.extract_strided_slice %29 {offsets = [0, 256], sizes = [8, 128], strides = [1, 1]} : vector<8x384xf32> to vector<8x128xf32>
    %33 = vector.extract_strided_slice %23 {offsets = [0, 384], sizes = [8, 128], strides = [1, 1]} : vector<8x512xf32> to vector<8x128xf32>
    %34 = math.tanh %33 : vector<8x128xf32>
    %35 = arith.mulf %31, %15 : vector<8x128xf32>
    %36 = arith.mulf %30, %34 : vector<8x128xf32>
    %37 = arith.addf %35, %36 : vector<8x128xf32>
    %38 = math.tanh %37 : vector<8x128xf32>
    %39 = arith.mulf %32, %38 : vector<8x128xf32>
    %c1_i32 = arith.constant 1 : i32
    %40 = arith.index_cast %c1_i32 : i32 to index
    %c0_21 = arith.constant 0 : index
    %c0_22 = arith.constant 0 : index
    %41 = vector.load %arg11[%40, %c0_21, %c0_22] : memref<8x8x512xbf16, #tpu.memory_space<vmem>>, vector<1x8x512xbf16>
    %42 = vector.shape_cast %41 : vector<1x8x512xbf16> to vector<8x512xbf16>
    %43 = arith.extf %42 : vector<8x512xbf16> to vector<8x512xf32>
    %44 = arith.addf %43, %13 : vector<8x512xf32>
    %45 = arith.truncf %39 : vector<8x128xf32> to vector<8x128xbf16>
    %cst_23 = arith.constant dense<0.000000e+00> : vector<8x512xf32>
    %46 = tpu.matmul %45, %10, %cst_23 {dimension_numbers = #tpu.dot_dimension_numbers<[1], [0], [0], [1], [0, 0, 1, 1], [], []>} : vector<8x128xbf16>, vector<128x512xbf16>, vector<8x512xf32> -> vector<8x512xf32>
    %47 = arith.addf %44, %46 : vector<8x512xf32>
    %48 = vector.extract_strided_slice %47 {offsets = [0, 0], sizes = [8, 384], strides = [1, 1]} : vector<8x512xf32> to vector<8x384xf32>
    %49 = arith.negf %48 : vector<8x384xf32>
    %50 = math.exp %49 : vector<8x384xf32>
    %cst_24 = arith.constant 1.000000e+00 : f32
    %51 = vector.broadcast %cst_24 : f32 to vector<8x384xf32>
    %52 = arith.addf %51, %50 : vector<8x384xf32>
    %53 = arith.divf %51, %52 : vector<8x384xf32>
    %54 = vector.extract_strided_slice %53 {offsets = [0, 0], sizes = [8, 128], strides = [1, 1]} : vector<8x384xf32> to vector<8x128xf32>
    %55 = vector.extract_strided_slice %53 {offsets = [0, 128], sizes = [8, 128], strides = [1, 1]} : vector<8x384xf32> to vector<8x128xf32>
    %56 = vector.extract_strided_slice %53 {offsets = [0, 256], sizes = [8, 128], strides = [1, 1]} : vector<8x384xf32> to vector<8x128xf32>
    %57 = vector.extract_strided_slice %47 {offsets = [0, 384], sizes = [8, 128], strides = [1, 1]} : vector<8x512xf32> to vector<8x128xf32>
    %58 = math.tanh %57 : vector<8x128xf32>
    %59 = arith.mulf %55, %37 : vector<8x128xf32>
    %60 = arith.mulf %54, %58 : vector<8x128xf32>
    %61 = arith.addf %59, %60 : vector<8x128xf32>
    %62 = math.tanh %61 : vector<8x128xf32>
    %63 = arith.mulf %56, %62 : vector<8x128xf32>
    %c2_i32 = arith.constant 2 : i32
    %64 = arith.index_cast %c2_i32 : i32 to index
    %c0_25 = arith.constant 0 : index
    %c0_26 = arith.constant 0 : index
    %65 = vector.load %arg11[%64, %c0_25, %c0_26] : memref<8x8x512xbf16, #tpu.memory_space<vmem>>, vector<1x8x512xbf16>
    %66 = vector.shape_cast %65 : vector<1x8x512xbf16> to vector<8x512xbf16>
    %67 = arith.extf %66 : vector<8x512xbf16> to vector<8x512xf32>
    %68 = arith.addf %67, %13 : vector<8x512xf32>
    %69 = arith.truncf %63 : vector<8x128xf32> to vector<8x128xbf16>
    %cst_27 = arith.constant dense<0.000000e+00> : vector<8x512xf32>
    %70 = tpu.matmul %69, %10, %cst_27 {dimension_numbers = #tpu.dot_dimension_numbers<[1], [0], [0], [1], [0, 0, 1, 1], [], []>} : vector<8x128xbf16>, vector<128x512xbf16>, vector<8x512xf32> -> vector<8x512xf32>
    %71 = arith.addf %68, %70 : vector<8x512xf32>
    %72 = vector.extract_strided_slice %71 {offsets = [0, 0], sizes = [8, 384], strides = [1, 1]} : vector<8x512xf32> to vector<8x384xf32>
    %73 = arith.negf %72 : vector<8x384xf32>
    %74 = math.exp %73 : vector<8x384xf32>
    %cst_28 = arith.constant 1.000000e+00 : f32
    %75 = vector.broadcast %cst_28 : f32 to vector<8x384xf32>
    %76 = arith.addf %75, %74 : vector<8x384xf32>
    %77 = arith.divf %75, %76 : vector<8x384xf32>
    %78 = vector.extract_strided_slice %77 {offsets = [0, 0], sizes = [8, 128], strides = [1, 1]} : vector<8x384xf32> to vector<8x128xf32>
    %79 = vector.extract_strided_slice %77 {offsets = [0, 128], sizes = [8, 128], strides = [1, 1]} : vector<8x384xf32> to vector<8x128xf32>
    %80 = vector.extract_strided_slice %77 {offsets = [0, 256], sizes = [8, 128], strides = [1, 1]} : vector<8x384xf32> to vector<8x128xf32>
    %81 = vector.extract_strided_slice %71 {offsets = [0, 384], sizes = [8, 128], strides = [1, 1]} : vector<8x512xf32> to vector<8x128xf32>
    %82 = math.tanh %81 : vector<8x128xf32>
    %83 = arith.mulf %79, %61 : vector<8x128xf32>
    %84 = arith.mulf %78, %82 : vector<8x128xf32>
    %85 = arith.addf %83, %84 : vector<8x128xf32>
    %86 = math.tanh %85 : vector<8x128xf32>
    %87 = arith.mulf %80, %86 : vector<8x128xf32>
    %c3_i32 = arith.constant 3 : i32
    %88 = arith.index_cast %c3_i32 : i32 to index
    %c0_29 = arith.constant 0 : index
    %c0_30 = arith.constant 0 : index
    %89 = vector.load %arg11[%88, %c0_29, %c0_30] : memref<8x8x512xbf16, #tpu.memory_space<vmem>>, vector<1x8x512xbf16>
    %90 = vector.shape_cast %89 : vector<1x8x512xbf16> to vector<8x512xbf16>
    %91 = arith.extf %90 : vector<8x512xbf16> to vector<8x512xf32>
    %92 = arith.addf %91, %13 : vector<8x512xf32>
    %93 = arith.truncf %87 : vector<8x128xf32> to vector<8x128xbf16>
    %cst_31 = arith.constant dense<0.000000e+00> : vector<8x512xf32>
    %94 = tpu.matmul %93, %10, %cst_31 {dimension_numbers = #tpu.dot_dimension_numbers<[1], [0], [0], [1], [0, 0, 1, 1], [], []>} : vector<8x128xbf16>, vector<128x512xbf16>, vector<8x512xf32> -> vector<8x512xf32>
    %95 = arith.addf %92, %94 : vector<8x512xf32>
    %96 = vector.extract_strided_slice %95 {offsets = [0, 0], sizes = [8, 384], strides = [1, 1]} : vector<8x512xf32> to vector<8x384xf32>
    %97 = arith.negf %96 : vector<8x384xf32>
    %98 = math.exp %97 : vector<8x384xf32>
    %cst_32 = arith.constant 1.000000e+00 : f32
    %99 = vector.broadcast %cst_32 : f32 to vector<8x384xf32>
    %100 = arith.addf %99, %98 : vector<8x384xf32>
    %101 = arith.divf %99, %100 : vector<8x384xf32>
    %102 = vector.extract_strided_slice %101 {offsets = [0, 0], sizes = [8, 128], strides = [1, 1]} : vector<8x384xf32> to vector<8x128xf32>
    %103 = vector.extract_strided_slice %101 {offsets = [0, 128], sizes = [8, 128], strides = [1, 1]} : vector<8x384xf32> to vector<8x128xf32>
    %104 = vector.extract_strided_slice %101 {offsets = [0, 256], sizes = [8, 128], strides = [1, 1]} : vector<8x384xf32> to vector<8x128xf32>
    %105 = vector.extract_strided_slice %95 {offsets = [0, 384], sizes = [8, 128], strides = [1, 1]} : vector<8x512xf32> to vector<8x128xf32>
    %106 = math.tanh %105 : vector<8x128xf32>
    %107 = arith.mulf %103, %85 : vector<8x128xf32>
    %108 = arith.mulf %102, %106 : vector<8x128xf32>
    %109 = arith.addf %107, %108 : vector<8x128xf32>
    %110 = math.tanh %109 : vector<8x128xf32>
    %111 = arith.mulf %104, %110 : vector<8x128xf32>
    %c4_i32 = arith.constant 4 : i32
    %112 = arith.index_cast %c4_i32 : i32 to index
    %c0_33 = arith.constant 0 : index
    %c0_34 = arith.constant 0 : index
    %113 = vector.load %arg11[%112, %c0_33, %c0_34] : memref<8x8x512xbf16, #tpu.memory_space<vmem>>, vector<1x8x512xbf16>
    %114 = vector.shape_cast %113 : vector<1x8x512xbf16> to vector<8x512xbf16>
    %115 = arith.extf %114 : vector<8x512xbf16> to vector<8x512xf32>
    %116 = arith.addf %115, %13 : vector<8x512xf32>
    %117 = arith.truncf %111 : vector<8x128xf32> to vector<8x128xbf16>
    %cst_35 = arith.constant dense<0.000000e+00> : vector<8x512xf32>
    %118 = tpu.matmul %117, %10, %cst_35 {dimension_numbers = #tpu.dot_dimension_numbers<[1], [0], [0], [1], [0, 0, 1, 1], [], []>} : vector<8x128xbf16>, vector<128x512xbf16>, vector<8x512xf32> -> vector<8x512xf32>
    %119 = arith.addf %116, %118 : vector<8x512xf32>
    %120 = vector.extract_strided_slice %119 {offsets = [0, 0], sizes = [8, 384], strides = [1, 1]} : vector<8x512xf32> to vector<8x384xf32>
    %121 = arith.negf %120 : vector<8x384xf32>
    %122 = math.exp %121 : vector<8x384xf32>
    %cst_36 = arith.constant 1.000000e+00 : f32
    %123 = vector.broadcast %cst_36 : f32 to vector<8x384xf32>
    %124 = arith.addf %123, %122 : vector<8x384xf32>
    %125 = arith.divf %123, %124 : vector<8x384xf32>
    %126 = vector.extract_strided_slice %125 {offsets = [0, 0], sizes = [8, 128], strides = [1, 1]} : vector<8x384xf32> to vector<8x128xf32>
    %127 = vector.extract_strided_slice %125 {offsets = [0, 128], sizes = [8, 128], strides = [1, 1]} : vector<8x384xf32> to vector<8x128xf32>
    %128 = vector.extract_strided_slice %125 {offsets = [0, 256], sizes = [8, 128], strides = [1, 1]} : vector<8x384xf32> to vector<8x128xf32>
    %129 = vector.extract_strided_slice %119 {offsets = [0, 384], sizes = [8, 128], strides = [1, 1]} : vector<8x512xf32> to vector<8x128xf32>
    %130 = math.tanh %129 : vector<8x128xf32>
    %131 = arith.mulf %127, %109 : vector<8x128xf32>
    %132 = arith.mulf %126, %130 : vector<8x128xf32>
    %133 = arith.addf %131, %132 : vector<8x128xf32>
    %134 = math.tanh %133 : vector<8x128xf32>
    %135 = arith.mulf %128, %134 : vector<8x128xf32>
    %c5_i32 = arith.constant 5 : i32
    %136 = arith.index_cast %c5_i32 : i32 to index
    %c0_37 = arith.constant 0 : index
    %c0_38 = arith.constant 0 : index
    %137 = vector.load %arg11[%136, %c0_37, %c0_38] : memref<8x8x512xbf16, #tpu.memory_space<vmem>>, vector<1x8x512xbf16>
    %138 = vector.shape_cast %137 : vector<1x8x512xbf16> to vector<8x512xbf16>
    %139 = arith.extf %138 : vector<8x512xbf16> to vector<8x512xf32>
    %140 = arith.addf %139, %13 : vector<8x512xf32>
    %141 = arith.truncf %135 : vector<8x128xf32> to vector<8x128xbf16>
    %cst_39 = arith.constant dense<0.000000e+00> : vector<8x512xf32>
    %142 = tpu.matmul %141, %10, %cst_39 {dimension_numbers = #tpu.dot_dimension_numbers<[1], [0], [0], [1], [0, 0, 1, 1], [], []>} : vector<8x128xbf16>, vector<128x512xbf16>, vector<8x512xf32> -> vector<8x512xf32>
    %143 = arith.addf %140, %142 : vector<8x512xf32>
    %144 = vector.extract_strided_slice %143 {offsets = [0, 0], sizes = [8, 384], strides = [1, 1]} : vector<8x512xf32> to vector<8x384xf32>
    %145 = arith.negf %144 : vector<8x384xf32>
    %146 = math.exp %145 : vector<8x384xf32>
    %cst_40 = arith.constant 1.000000e+00 : f32
    %147 = vector.broadcast %cst_40 : f32 to vector<8x384xf32>
    %148 = arith.addf %147, %146 : vector<8x384xf32>
    %149 = arith.divf %147, %148 : vector<8x384xf32>
    %150 = vector.extract_strided_slice %149 {offsets = [0, 0], sizes = [8, 128], strides = [1, 1]} : vector<8x384xf32> to vector<8x128xf32>
    %151 = vector.extract_strided_slice %149 {offsets = [0, 128], sizes = [8, 128], strides = [1, 1]} : vector<8x384xf32> to vector<8x128xf32>
    %152 = vector.extract_strided_slice %149 {offsets = [0, 256], sizes = [8, 128], strides = [1, 1]} : vector<8x384xf32> to vector<8x128xf32>
    %153 = vector.extract_strided_slice %143 {offsets = [0, 384], sizes = [8, 128], strides = [1, 1]} : vector<8x512xf32> to vector<8x128xf32>
    %154 = math.tanh %153 : vector<8x128xf32>
    %155 = arith.mulf %151, %133 : vector<8x128xf32>
    %156 = arith.mulf %150, %154 : vector<8x128xf32>
    %157 = arith.addf %155, %156 : vector<8x128xf32>
    %158 = math.tanh %157 : vector<8x128xf32>
    %159 = arith.mulf %152, %158 : vector<8x128xf32>
    %c6_i32 = arith.constant 6 : i32
    %160 = arith.index_cast %c6_i32 : i32 to index
    %c0_41 = arith.constant 0 : index
    %c0_42 = arith.constant 0 : index
    %161 = vector.load %arg11[%160, %c0_41, %c0_42] : memref<8x8x512xbf16, #tpu.memory_space<vmem>>, vector<1x8x512xbf16>
    %162 = vector.shape_cast %161 : vector<1x8x512xbf16> to vector<8x512xbf16>
    %163 = arith.extf %162 : vector<8x512xbf16> to vector<8x512xf32>
    %164 = arith.addf %163, %13 : vector<8x512xf32>
    %165 = arith.truncf %159 : vector<8x128xf32> to vector<8x128xbf16>
    %cst_43 = arith.constant dense<0.000000e+00> : vector<8x512xf32>
    %166 = tpu.matmul %165, %10, %cst_43 {dimension_numbers = #tpu.dot_dimension_numbers<[1], [0], [0], [1], [0, 0, 1, 1], [], []>} : vector<8x128xbf16>, vector<128x512xbf16>, vector<8x512xf32> -> vector<8x512xf32>
    %167 = arith.addf %164, %166 : vector<8x512xf32>
    %168 = vector.extract_strided_slice %167 {offsets = [0, 0], sizes = [8, 384], strides = [1, 1]} : vector<8x512xf32> to vector<8x384xf32>
    %169 = arith.negf %168 : vector<8x384xf32>
    %170 = math.exp %169 : vector<8x384xf32>
    %cst_44 = arith.constant 1.000000e+00 : f32
    %171 = vector.broadcast %cst_44 : f32 to vector<8x384xf32>
    %172 = arith.addf %171, %170 : vector<8x384xf32>
    %173 = arith.divf %171, %172 : vector<8x384xf32>
    %174 = vector.extract_strided_slice %173 {offsets = [0, 0], sizes = [8, 128], strides = [1, 1]} : vector<8x384xf32> to vector<8x128xf32>
    %175 = vector.extract_strided_slice %173 {offsets = [0, 128], sizes = [8, 128], strides = [1, 1]} : vector<8x384xf32> to vector<8x128xf32>
    %176 = vector.extract_strided_slice %173 {offsets = [0, 256], sizes = [8, 128], strides = [1, 1]} : vector<8x384xf32> to vector<8x128xf32>
    %177 = vector.extract_strided_slice %167 {offsets = [0, 384], sizes = [8, 128], strides = [1, 1]} : vector<8x512xf32> to vector<8x128xf32>
    %178 = math.tanh %177 : vector<8x128xf32>
    %179 = arith.mulf %175, %157 : vector<8x128xf32>
    %180 = arith.mulf %174, %178 : vector<8x128xf32>
    %181 = arith.addf %179, %180 : vector<8x128xf32>
    %182 = math.tanh %181 : vector<8x128xf32>
    %183 = arith.mulf %176, %182 : vector<8x128xf32>
    %c7_i32 = arith.constant 7 : i32
    %184 = arith.index_cast %c7_i32 : i32 to index
    %c0_45 = arith.constant 0 : index
    %c0_46 = arith.constant 0 : index
    %185 = vector.load %arg11[%184, %c0_45, %c0_46] : memref<8x8x512xbf16, #tpu.memory_space<vmem>>, vector<1x8x512xbf16>
    %186 = vector.shape_cast %185 : vector<1x8x512xbf16> to vector<8x512xbf16>
    %187 = arith.extf %186 : vector<8x512xbf16> to vector<8x512xf32>
    %188 = arith.addf %187, %13 : vector<8x512xf32>
    %189 = arith.truncf %183 : vector<8x128xf32> to vector<8x128xbf16>
    %cst_47 = arith.constant dense<0.000000e+00> : vector<8x512xf32>
    %190 = tpu.matmul %189, %10, %cst_47 {dimension_numbers = #tpu.dot_dimension_numbers<[1], [0], [0], [1], [0, 0, 1, 1], [], []>} : vector<8x128xbf16>, vector<128x512xbf16>, vector<8x512xf32> -> vector<8x512xf32>
    %191 = arith.addf %188, %190 : vector<8x512xf32>
    %192 = vector.extract_strided_slice %191 {offsets = [0, 0], sizes = [8, 384], strides = [1, 1]} : vector<8x512xf32> to vector<8x384xf32>
    %193 = arith.negf %192 : vector<8x384xf32>
    %194 = math.exp %193 : vector<8x384xf32>
    %cst_48 = arith.constant 1.000000e+00 : f32
    %195 = vector.broadcast %cst_48 : f32 to vector<8x384xf32>
    %196 = arith.addf %195, %194 : vector<8x384xf32>
    %197 = arith.divf %195, %196 : vector<8x384xf32>
    %198 = vector.extract_strided_slice %197 {offsets = [0, 0], sizes = [8, 128], strides = [1, 1]} : vector<8x384xf32> to vector<8x128xf32>
    %199 = vector.extract_strided_slice %197 {offsets = [0, 128], sizes = [8, 128], strides = [1, 1]} : vector<8x384xf32> to vector<8x128xf32>
    %200 = vector.extract_strided_slice %197 {offsets = [0, 256], sizes = [8, 128], strides = [1, 1]} : vector<8x384xf32> to vector<8x128xf32>
    %201 = vector.extract_strided_slice %191 {offsets = [0, 384], sizes = [8, 128], strides = [1, 1]} : vector<8x512xf32> to vector<8x128xf32>
    %202 = math.tanh %201 : vector<8x128xf32>
    %203 = arith.mulf %199, %181 : vector<8x128xf32>
    %204 = arith.mulf %198, %202 : vector<8x128xf32>
    %205 = arith.addf %203, %204 : vector<8x128xf32>
    %206 = math.tanh %205 : vector<8x128xf32>
    %207 = arith.mulf %200, %206 : vector<8x128xf32>
    %c8_i32 = arith.constant 8 : i32
    %c0_49 = arith.constant 0 : index
    %c0_50 = arith.constant 0 : index
    %208 = vector.load %arg9[%c0_49, %c0_50] : memref<8x128xf32, #tpu.memory_space<vmem>>, vector<8x128xf32>
    tpu.vector_store %arg9[%c0_49, %c0_50], %207 {strides = array<i32>} : memref<8x128xf32, #tpu.memory_space<vmem>>, vector<8x128xf32>,
    %c0_51 = arith.constant 0 : index
    %c0_52 = arith.constant 0 : index
    %209 = vector.load %arg10[%c0_51, %c0_52] : memref<8x128xf32, #tpu.memory_space<vmem>>, vector<8x128xf32>
    tpu.vector_store %arg10[%c0_51, %c0_52], %205 {strides = array<i32>} : memref<8x128xf32, #tpu.memory_space<vmem>>, vector<8x128xf32>,
    %c0_i32_53 = arith.constant 0 : i32
    %210 = arith.cmpi eq, %arg1, %c0_i32_53 : i32
    %211 = arith.extui %210 : i1 to i32
    %c0_i32_54 = arith.constant 0 : i32
    %212 = arith.cmpi ne, %211, %c0_i32_54 : i32
    scf.if %212 {
      %213 = arith.truncf %207 : vector<8x128xf32> to vector<8x128xbf16>
      %c0_55 = arith.constant 0 : index
      %c0_56 = arith.constant 0 : index
      %214 = vector.load %arg6[%c0_55, %c0_56] : memref<128x128xbf16, #tpu.memory_space<vmem>>, vector<128x128xbf16>
      %cst_57 = arith.constant dense<0.000000e+00> : vector<8x128xf32>
      %215 = tpu.matmul %213, %214, %cst_57 {dimension_numbers = #tpu.dot_dimension_numbers<[1], [0], [0], [1], [0, 0, 1, 1], [], []>} : vector<8x128xbf16>, vector<128x128xbf16>, vector<8x128xf32> -> vector<8x128xf32>
      %c0_58 = arith.constant 0 : index
      %c0_59 = arith.constant 0 : index
      %216 = vector.load %arg7[%c0_58, %c0_59] : memref<1x128xf32, #tpu.memory_space<vmem>>, vector<1x128xf32>
      %217 = vector.broadcast %216 : vector<1x128xf32> to vector<8x128xf32>
      %218 = arith.addf %215, %217 : vector<8x128xf32>
      %219 = tpu.iota {dimensions = array<i32: 1>} : vector<8x128xi32>
      %c4_i32_60 = arith.constant 4 : i32
      %220 = vector.broadcast %c4_i32_60 : i32 to vector<8x128xi32>
      %221 = arith.cmpi slt, %219, %220 : vector<8x128xi32>
      %cst_61 = arith.constant -1.000000e+30 : f32
      %222 = vector.broadcast %cst_61 : f32 to vector<8x128xf32>
      %223 = arith.select %221, %218, %222 : vector<8x128xi1>, vector<8x128xf32>
      %cst_62 = arith.constant dense<0xFF800000> : vector<8xf32>
      %224 = vector.multi_reduction <maximumf>, %223, %cst_62 [1] : vector<8x128xf32> to vector<8xf32>
      %225 = vector.shape_cast %224 : vector<8xf32> to vector<8x1xf32>
      %226 = vector.broadcast %225 : vector<8x1xf32> to vector<8x128xf32>
      %227 = arith.subf %223, %226 : vector<8x128xf32>
      %228 = math.exp %227 : vector<8x128xf32>
      %cst_63 = arith.constant dense<0.000000e+00> : vector<8xf32>
      %229 = vector.multi_reduction <add>, %228, %cst_63 [1] : vector<8x128xf32> to vector<8xf32>
      %230 = vector.shape_cast %229 : vector<8xf32> to vector<8x1xf32>
      %231 = math.log %230 : vector<8x1xf32>
      %232 = vector.broadcast %231 : vector<8x1xf32> to vector<8x128xf32>
      %233 = arith.subf %227, %232 : vector<8x128xf32>
      %c0_64 = arith.constant 0 : index
      %c0_65 = arith.constant 0 : index
      %234 = vector.load %arg8[%c0_64, %c0_65] : memref<8x128xf32, #tpu.memory_space<vmem>>, vector<8x128xf32>
      tpu.vector_store %arg8[%c0_64, %c0_65], %233 {strides = array<i32>} : memref<8x128xf32, #tpu.memory_space<vmem>>, vector<8x128xf32>,
    } else {
    }
    return
  }
  func.func @transform_0(%arg0: i32, %arg1: i32) -> (i32, i32, i32) {
    %c0_i32 = arith.constant 0 : i32
    %c0_i32_0 = arith.constant 0 : i32
    return %arg0, %arg1, %c0_i32 : i32, i32, i32
  }
  func.func @transform_1(%arg0: i32, %arg1: i32) -> (i32, i32) {
    %c0_i32 = arith.constant 0 : i32
    %c0_i32_0 = arith.constant 0 : i32
    %c0_i32_1 = arith.constant 0 : i32
    return %c0_i32, %c0_i32_0 : i32, i32
  }
  func.func @transform_2(%arg0: i32, %arg1: i32) -> (i32, i32) {
    %c0_i32 = arith.constant 0 : i32
    %c0_i32_0 = arith.constant 0 : i32
    %c0_i32_1 = arith.constant 0 : i32
    return %c0_i32, %c0_i32_0 : i32, i32
  }
  func.func @transform_3(%arg0: i32, %arg1: i32) -> (i32, i32) {
    %c0_i32 = arith.constant 0 : i32
    %c0_i32_0 = arith.constant 0 : i32
    %c0_i32_1 = arith.constant 0 : i32
    return %c0_i32, %c0_i32_0 : i32, i32
  }
  func.func @transform_4(%arg0: i32, %arg1: i32) -> (i32, i32) {
    %c0_i32 = arith.constant 0 : i32
    %c0_i32_0 = arith.constant 0 : i32
    %c0_i32_1 = arith.constant 0 : i32
    return %c0_i32, %c0_i32_0 : i32, i32
  }
  func.func @transform_5(%arg0: i32, %arg1: i32) -> (i32, i32) {
    %c0_i32 = arith.constant 0 : i32
    %c0_i32_0 = arith.constant 0 : i32
    %c0_i32_1 = arith.constant 0 : i32
    return %c0_i32, %c0_i32_0 : i32, i32
  }
  func.func @transform_6(%arg0: i32, %arg1: i32) -> (i32, i32) {
    %c0_i32 = arith.constant 0 : i32
    %c0_i32_0 = arith.constant 0 : i32
    return %arg0, %c0_i32 : i32, i32
  }
}

</mosaic_0001>

<bundles_post_ra>
// kernel: tpu_custom_call.1
= control target key start
LH: loop header
LB: loop body
LE: loop exit
PB: predicated region body
PF: predicated region fallthrough
CT: control target
= control target key end

     0   :  { %11 = vsyncpa [#allocation6], 0  ;;  %s2898_s0 = inlined_call_operand.vmem [shape: bf16[1,64,16], index: 0, kind: input, shape index: {}]   ;;  %s2899_s1 = inlined_call_operand.vmem [shape: bf16[16,512], index: 1, kind: input, shape index: {}]   ;;  %s2900_s2 = inlined_call_operand.hbm [shape: bf16[128,512], index: 2, kind: input, shape index: {}]   ;;  %s2901_s3 = inlined_call_operand.vmem [shape: f32[1,512], index: 3, kind: input, shape index: {}]   ;;  %s2902_s4 = inlined_call_operand.hbm [shape: bf16[128,128], index: 4, kind: input, shape index: {}]   ;;  %s2903_s5 = inlined_call_operand.vmem [shape: f32[1,128], index: 5, kind: input, shape index: {}]   ;;  %s2904_s6 = inlined_call_operand.hbm [shape: f32[8,128], index: 6, kind: output, shape index: {}]  }
   0x1   :  { %12 = vsyncpa [#allocation9], 0 }
   0x2   :  { %13 = vsyncpa [#allocation7], 0  ;;  %s2208_s21 = smov [#allocation5]   ;;  %s2136_s25 = scalar_lea.hbm %s2900_s2, 4096 }
   0x3   :  { %s23_s22 = sshll.u32 %s2208_s21, 4  ;;  %p2137_p0 = scmp.ne.s32.totalorder %s2900_s2, %s2136_s25  ;;  %s24_s22 = int_to_ptr.vmem [resolvable:$true] %s23_s22 }
   0x4   :  { %p2140_p1 = scmp.lt.u32.totalorder %s2136_s25, %s2900_s2 }
   0x6   :  { %p2142_p2 = pnand %p2140_p1, %p2137_p0 }
   0x8   :  { %2145 = shalt.err (!%p2142_p2)
}
   0x9   :  { %s2146_s30 = scalar_lea.vmem %s24_s22, 4096  ;;  %p2151_p4 = scmp.lt.s32.totalorder %s24_s22, %s24_s22 }
   0xa   :  { %p2147_p3 = scmp.ne.s32.totalorder %s24_s22, %s2146_s30  ;;  %p2152_p5 = scmp.lt.s32.totalorder %s2146_s30, %s2146_s30 }
   0xc   :  { %p2153_p6 = por %p2152_p5, %p2151_p4 }
   0xe   :  { %p2154_p7 = pnand %p2153_p6, %p2147_p3 }
  0x10   :  { %2157 = shalt.err (!%p2154_p7)
}
  0x11   :  { %s2209_s7 = smov 256   ;;  %s2210_s8 = smov 16  }
  0x12   :  { %29 = dma.hbm_to_vmem [thread:$0]  %s2900_s2, 4096, %s24_s22, [#allocation6], %s2209_s7, %s2209_s7, %s2210_s8  }
  0x13   :  { %s2211_s11 = smov [#allocation8]   ;;  %s2158_s15 = scalar_lea.hbm %s2902_s4, 1024 }
  0x14   :  { %s37_s12 = sshll.u32 %s2211_s11, 4  ;;  %p2159_p8 = scmp.ne.s32.totalorder %s2902_s4, %s2158_s15  ;;  %s38_s12 = int_to_ptr.vmem [resolvable:$true] %s37_s12 }
  0x15   :  { %p2162_p9 = scmp.lt.u32.totalorder %s2158_s15, %s2902_s4 }
  0x17   :  { %p2164_p10 = pnand %p2162_p9, %p2159_p8 }
  0x19   :  { %2167 = shalt.err (!%p2164_p10)
}
  0x1a   :  { %s2168_s20 = scalar_lea.vmem %s38_s12, 1024  ;;  %p2173_p12 = scmp.lt.s32.totalorder %s38_s12, %s38_s12 }
  0x1b   :  { %p2169_p11 = scmp.ne.s32.totalorder %s38_s12, %s2168_s20  ;;  %p2174_p13 = scmp.lt.s32.totalorder %s2168_s20, %s2168_s20 }
  0x1d   :  { %p2175_p0 = por %p2174_p13, %p2173_p12 }
  0x1f   :  { %p2176_p1 = pnand %p2175_p0, %p2169_p11 }
  0x21   :  { %2179 = shalt.err (!%p2176_p1)
}
  0x22   :  { %s2212_s2 = smov 64   ;;  %s2213_s21 = smov 4  }
  0x23   :  { %43 = dma.hbm_to_vmem [thread:$0]  %s2902_s4, 1024, %s38_s12, [#allocation9], %s2212_s2, %s2212_s2, %s2213_s21  }
  0x24   :  { %2202 = dma.done.wait [#allocation6], 4096  }
  0x25   :  { %2203 = vsyncadd [#allocation6], 4294963200 }
  0x26   :  { %2204 = dma.done.wait [#allocation9], 1024  }
  0x27   :  { %2205 = vsyncadd [#allocation9], 4294966272  ;;  %v2906_v0 = vmov 0   ;;  %v1906_v1 = vld [vmem:[%s2899_s1 + $0x4] ss:$16 sps:$4 sm:$0xff]   ;;  %vm111_vm0 = vcmask 130048   ;;  %v2905_v42 = vlaneseq }
  0x28   :  { %156 = vmatprep.mubr.bf16.mxu0 %v2906_v0  ;;  %229 = vmatprep.mubr.bf16.mxu1 %v2906_v0  ;;  %v1908_v2 = vld [vmem:[%s2899_s1 + $0xc] ss:$16 sps:$4 sm:$0xff]   ;;  %v1910_v3 = vld [vmem:[%s2899_s1] ss:$16 sps:$4 sm:$0xff]   ;;  %v1911_v4 = vld [vmem:[%s2899_s1 + $0x8] ss:$16 sps:$4 sm:$0xff]  }
  0x29   :  { %124 = vmatprep.subr.bf16.mxu0 %v1906_v1  ;;  %197 = vmatprep.subr.bf16.mxu1 %v1908_v2  ;;  %v1912_v5 = vld [vmem:[%s2898_s0] sm:$0xff]   ;;  %v2297_v7 = vld [vmem:[#allocation5 + $0xc] ss:$16 sps:$4 sm:$0xff]   ;;  %v2302_v9 = vld [vmem:[#allocation5 + $0x8] ss:$16 sps:$4 sm:$0xff]   ;;  %v2215_v41 = vmov 0.0|0.0  }
  0x2a   :  { %125 = vmatpush1.bf16.msra.mxu0 %v1910_v3  ;;  %198 = vmatpush1.bf16.msra.mxu1 %v1911_v4  ;;  %v2295_v6 = vld [vmem:[#allocation5 + $0x4] ss:$16 sps:$4 sm:$0xff]   ;;  %v2299_v8 = vld [vmem:[#allocation5] ss:$16 sps:$4 sm:$0xff]   ;;  %v2310_v11 = vld [vmem:[#allocation5 + $0x2c] ss:$16 sps:$4 sm:$0xff]  }
  0x2b   :  { %641 = vmatprep.subr.bf16.mxu0 %v2295_v6  ;;  %v2306_v10 = vld [vmem:[#allocation5 + $0x24] ss:$16 sps:$4 sm:$0xff]   ;;  %682 = vmatprep.subr.bf16.mxu1 %v2297_v7  ;;  %v2312_v12 = vld [vmem:[#allocation5 + $0x20] ss:$16 sps:$4 sm:$0xff]   ;;  %v2314_v13 = vld [vmem:[#allocation5 + $0x28] ss:$16 sps:$4 sm:$0xff]  }
  0x2c   :  { %v1925_v14 = vld [vmem:[%s2898_s0 + $0x8] sm:$0xff]   ;;  %v2323_v15 = vld [vmem:[#allocation5 + $0x44] ss:$16 sps:$4 sm:$0xff]   ;;  %v2329_v17 = vld [vmem:[#allocation5 + $0x40] ss:$16 sps:$4 sm:$0xff]   ;;  %v449_v43 = vshrl.u32 %v2905_v42, 7 }
  0x2d   :  { %1761 = vmatmul.mubr.msk.bf16.vlgmr.msra.gmra.mrb[0].mxu0 %vm111_vm0, %v1912_v5  ;;  %1765 = vmatmul.mubr.msk.bf16.vlgmr.msra.gmra.mrb[0].mxu1 %vm111_vm0, %v1912_v5  ;;  %v2326_v16 = vld [vmem:[#allocation5 + $0x4c] ss:$16 sps:$4 sm:$0xff]   ;;  %v2331_v18 = vld [vmem:[#allocation5 + $0x48] ss:$16 sps:$4 sm:$0xff]   ;;  %v2335_v19 = vld [vmem:[#allocation5 + $0x64] ss:$16 sps:$4 sm:$0xff]  }
  0x2e   :  { %642 = vmatpush1.bf16.msra.mxu0 %v2299_v8  ;;  %683 = vmatpush1.bf16.msra.mxu1 %v2302_v9  ;;  %v2338_v20 = vld [vmem:[#allocation5 + $0x6c] ss:$16 sps:$4 sm:$0xff]   ;;  %v2342_v21 = vld [vmem:[#allocation5 + $0x60] ss:$16 sps:$4 sm:$0xff]   ;;  %v2345_v22 = vld [vmem:[#allocation5 + $0x68] ss:$16 sps:$4 sm:$0xff]  }
  0x2f   :  { %643 = vmatprep.subr.bf16.mxu0 %v2306_v10  ;;  %684 = vmatprep.subr.bf16.mxu1 %v2310_v11  ;;  %v2350_v23 = vld [vmem:[#allocation5 + $0x84] ss:$16 sps:$4 sm:$0xff]   ;;  %v2354_v24 = vld [vmem:[#allocation5 + $0x8c] ss:$16 sps:$4 sm:$0xff]   ;;  %v2360_v26 = vld [vmem:[#allocation5 + $0x80] ss:$16 sps:$4 sm:$0xff]  }
  0x30   :  { %166 = vmatprep.mubr.bf16.mxu0 %v2906_v0  ;;  %239 = vmatprep.mubr.bf16.mxu1 %v2906_v0  ;;  %v1938_v25 = vld [vmem:[%s2898_s0 + $0x10] sm:$0xff]   ;;  %v2364_v27 = vld [vmem:[#allocation5 + $0x88] ss:$16 sps:$4 sm:$0xff]   ;;  %v2369_v29 = vld [vmem:[#allocation5 + $0xac] ss:$16 sps:$4 sm:$0xff]   ;;  %v458_v48 = vsub.s32 2, %v449_v43 }
  0x31   :  { %v2366_v28 = vld [vmem:[#allocation5 + $0xa4] ss:$16 sps:$4 sm:$0xff]   ;;  %v2374_v30 = vld [vmem:[#allocation5 + $0xa0] ss:$16 sps:$4 sm:$0xff]   ;;  %v2376_v31 = vld [vmem:[#allocation5 + $0xa8] ss:$16 sps:$4 sm:$0xff]  }
  0x32   :  { %644 = vmatpush1.bf16.msra.mxu0 %v2312_v12  ;;  %685 = vmatpush1.bf16.msra.mxu1 %v2314_v13  ;;  %v1951_v32 = vld [vmem:[%s2898_s0 + $0x18] sm:$0xff]   ;;  %v2384_v33 = vld [vmem:[#allocation5 + $0xc4] ss:$16 sps:$4 sm:$0xff]   ;;  %v2390_v35 = vld [vmem:[#allocation5 + $0xc0] ss:$16 sps:$4 sm:$0xff]   ;;  %v462_v49 = vsub.s32 3, %v449_v43 }
  0x33   :  { %645 = vmatprep.subr.bf16.mxu0 %v2323_v15  ;;  %686 = vmatprep.subr.bf16.mxu1 %v2326_v16  ;;  %v2388_v34 = vld [vmem:[#allocation5 + $0xcc] ss:$16 sps:$4 sm:$0xff]   ;;  %v2392_v36 = vld [vmem:[#allocation5 + $0xc8] ss:$16 sps:$4 sm:$0xff]   ;;  %v2394_v37 = vld [vmem:[#allocation5 + $0xe4] ss:$16 sps:$4 sm:$0xff]  }
  0x34   :  { %v2397_v38 = vld [vmem:[#allocation5 + $0xec] ss:$16 sps:$4 sm:$0xff]   ;;  %v2402_v39 = vld [vmem:[#allocation5 + $0xe0] ss:$16 sps:$4 sm:$0xff]   ;;  %v2410_v40 = vld [vmem:[#allocation5 + $0xe8] ss:$16 sps:$4 sm:$0xff]  }
  0x35   :  { %1762 = vmatmul.mubr.msk.bf16.gmra.mrb[4].mxu0 %vm111_vm0, %v1925_v14  ;;  %1766 = vmatmul.mubr.msk.bf16.gmra.mrb[4].mxu1 %vm111_vm0, %v1925_v14  ;;  %v450_v54 = vsub.s32 0, %v449_v43  ;;  %v454_v55 = vsub.s32 1, %v449_v43  ;;  %v446_v58 = vld [vmem:[%s2901_s3] sm:$0xf]  ;;  %vm2217_vm1 = vmmov 0   ;;  %s2218_s16 = smov [#allocation10]  }
  0x36   :  { %646 = vmatpush1.bf16.msra.mxu0 %v2329_v17  ;;  %176 = vmatprep.mubr.bf16.mxu0 %v2906_v0  ;;  %v2460_v61 = vrot.slane %v446_v58, %v458_v48  ;;  %v2462_v62 = vrot.slane %v446_v58, %v462_v49  ;;  %s1743_s17 = sshll.u32 %s2218_s16, 4  ;;  %s1744_s17 = int_to_ptr.vmem [resolvable:$true] %s1743_s17 }
  0x37   :  { %687 = vmatpush1.bf16.msra.mxu1 %v2331_v18  ;;  %647 = vmatprep.subr.bf16.mxu0 %v2335_v19  ;;  %v2464_v2 = vrot.slane %v446_v58, %v450_v54  ;;  %v2466_v3 = vrot.slane %v446_v58, %v454_v55  ;;  %p2185_p3 = scmp.lt.s32.totalorder %s1744_s17, %s1744_s17 }
  0x38   :  { %688 = vmatprep.subr.bf16.mxu1 %v2338_v20  ;;  %249 = vmatprep.mubr.bf16.mxu1 %v2906_v0 }
  0x3a   :  { %648 = vmatpush1.bf16.msra.mxu0 %v2342_v21 }
  0x3b   :  { %689 = vmatpush1.bf16.msra.mxu1 %v2345_v22  ;;  %649 = vmatprep.subr.bf16.mxu0 %v2350_v23 }
  0x3c   :  { %690 = vmatprep.subr.bf16.mxu1 %v2354_v24 }
  0x3d   :  { %1763 = vmatmul.mubr.msk.bf16.gmra.mrb[8].mxu0 %vm111_vm0, %v1938_v25  ;;  %1767 = vmatmul.mubr.msk.bf16.gmra.mrb[8].mxu1 %vm111_vm0, %v1938_v25 }
  0x3e   :  { %650 = vmatpush1.bf16.msra.mxu0 %v2360_v26  ;;  %186 = vmatprep.mubr.bf16.mxu0 %v2906_v0 }
  0x3f   :  { %691 = vmatpush1.bf16.msra.mxu1 %v2364_v27  ;;  %651 = vmatprep.subr.bf16.mxu0 %v2366_v28 }
  0x40   :  { %692 = vmatprep.subr.bf16.mxu1 %v2369_v29  ;;  %259 = vmatprep.mubr.bf16.mxu1 %v2906_v0 }
  0x42   :  { %652 = vmatpush1.bf16.msra.mxu0 %v2374_v30 }
  0x43   :  { %693 = vmatpush1.bf16.msra.mxu1 %v2376_v31  ;;  %653 = vmatprep.subr.bf16.mxu0 %v2384_v33 }
  0x44   :  { %694 = vmatprep.subr.bf16.mxu1 %v2388_v34 }
  0x45   :  { %1764 = vmatmul.mubr.msk.bf16.gmra.mrb[12].mxu0 %vm111_vm0, %v1951_v32  ;;  %1768 = vmatmul.mubr.msk.bf16.gmra.mrb[12].mxu1 %vm111_vm0, %v1951_v32 }
  0x46   :  { %654 = vmatpush1.bf16.msra.mxu0 %v2390_v35  ;;  %673 = vmatprep.mubr.bf16.mxu0 %v2906_v0 }
  0x47   :  { %695 = vmatpush1.bf16.msra.mxu1 %v2392_v36  ;;  %655 = vmatprep.subr.bf16.mxu0 %v2394_v37 }
  0x48   :  { %696 = vmatprep.subr.bf16.mxu1 %v2397_v38  ;;  %714 = vmatprep.mubr.bf16.mxu1 %v2906_v0 }
  0x4a   :  { %656 = vmatpush1.bf16.msra.mxu0 %v2402_v39 }
  0x4b   :  { %697 = vmatpush1.bf16.msra.mxu1 %v2410_v40  ;;  %763 = vmatprep.subr.bf16.mxu0 %v2295_v6 }
  0x4c   :  { %804 = vmatprep.subr.bf16.mxu1 %v2297_v7 }
  0x4d   :  { %674 = vmatmul.mubr.bf16.vlgmr.msra.gmra.mrb[16].mxu0 %v2215_v41 }
  0x4e   :  { %715 = vmatmul.mubr.bf16.vlgmr.msra.gmra.mrb[16].mxu1 %v2215_v41  ;;  %764 = vmatpush1.bf16.msra.mxu0 %v2299_v8 }
  0x4f   :  { %805 = vmatpush1.bf16.msra.mxu1 %v2302_v9  ;;  %765 = vmatprep.subr.bf16.mxu0 %v2306_v10 }
  0x50   :  { %806 = vmatprep.subr.bf16.mxu1 %v2310_v11  ;;  %795 = vmatprep.mubr.bf16.mxu0 %v2906_v0 }
  0x51   :  { %836 = vmatprep.mubr.bf16.mxu1 %v2906_v0 }
  0x52   :  { %766 = vmatpush1.bf16.msra.mxu0 %v2312_v12 }
  0x53   :  { %807 = vmatpush1.bf16.msra.mxu1 %v2314_v13  ;;  %767 = vmatprep.subr.bf16.mxu0 %v2323_v15 }
  0x54   :  { %808 = vmatprep.subr.bf16.mxu1 %v2326_v16 }
  0x56   :  { %768 = vmatpush1.bf16.msra.mxu0 %v2329_v17 }
  0x57   :  { %809 = vmatpush1.bf16.msra.mxu1 %v2331_v18  ;;  %769 = vmatprep.subr.bf16.mxu0 %v2335_v19 }
  0x58   :  { %810 = vmatprep.subr.bf16.mxu1 %v2338_v20 }
  0x5a   :  { %770 = vmatpush1.bf16.msra.mxu0 %v2342_v21 }
  0x5b   :  { %811 = vmatpush1.bf16.msra.mxu1 %v2345_v22  ;;  %771 = vmatprep.subr.bf16.mxu0 %v2350_v23 }
  0x5c   :  { %812 = vmatprep.subr.bf16.mxu1 %v2354_v24 }
  0x5e   :  { %772 = vmatpush1.bf16.msra.mxu0 %v2360_v26 }
  0x5f   :  { %813 = vmatpush1.bf16.msra.mxu1 %v2364_v27  ;;  %773 = vmatprep.subr.bf16.mxu0 %v2366_v28 }
  0x60   :  { %814 = vmatprep.subr.bf16.mxu1 %v2369_v29 }
  0x62   :  { %774 = vmatpush1.bf16.msra.mxu0 %v2374_v30 }
  0x63   :  { %815 = vmatpush1.bf16.msra.mxu1 %v2376_v31  ;;  %775 = vmatprep.subr.bf16.mxu0 %v2384_v33 }
  0x64   :  { %816 = vmatprep.subr.bf16.mxu1 %v2388_v34 }
  0x66   :  { %776 = vmatpush1.bf16.msra.mxu0 %v2390_v35 }
  0x67   :  { %817 = vmatpush1.bf16.msra.mxu1 %v2392_v36  ;;  %777 = vmatprep.subr.bf16.mxu0 %v2394_v37 }
  0x68   :  { %818 = vmatprep.subr.bf16.mxu1 %v2397_v38 }
  0x6a   :  { %778 = vmatpush1.bf16.msra.mxu0 %v2402_v39 }
  0x6b   :  { %819 = vmatpush1.bf16.msra.mxu1 %v2410_v40  ;;  %885 = vmatprep.subr.bf16.mxu0 %v2295_v6 }
  0x6c   :  { %926 = vmatprep.subr.bf16.mxu1 %v2297_v7 }
 0x100   :  { %v158_v44 = vpop.f32.mrb[0].mxu0  ;;  %v231_v45 = vpop.f32.mrb[0].mxu1 }
 0x101   :  { %v160_v46 = vpop.f32.mrb[1].mxu0  ;;  %v233_v47 = vpop.f32.mrb[1].mxu1 }
 0x102   :  { %v2453_v50 = vpack.c.bf16 %v160_v46, %v158_v44  ;;  %v162_v51 = vpop.f32.mrb[2].mxu0  ;;  %v2455_v52 = vpack.c.bf16 %v233_v47, %v231_v45  ;;  %v235_v53 = vpop.f32.mrb[2].mxu1 }
 0x103   :  { %v164_v56 = vpop.f32.mrb[3].mxu0  ;;  %v237_v57 = vpop.f32.mrb[3].mxu1 }
 0x104   :  { %v1852_v59 = vpack.c.bf16 %v164_v56, %v162_v51  ;;  %v1853_v60 = vpack.c.bf16 %v237_v57, %v235_v53 }
 0x106   :  { %v754_v63 = vunpack.c.l.bf16 %v1852_v59  ;;  %v755_v1 = vunpack.c.h.bf16 %v1852_v59  ;;  %v756_v4 = vunpack.c.l.bf16 %v1853_v60  ;;  %v757_v5 = vunpack.c.h.bf16 %v1853_v60 }
 0x108   :  { %v168_v14 = vpop.f32.mrb[4].mxu0  ;;  %v241_v25 = vpop.f32.mrb[4].mxu1  ;;  %v2469_v32 = vadd.f32 %v754_v63, %v2464_v2  ;;  %v2472_v41 = vadd.f32 %v755_v1, %v2466_v3  ;;  %v2475_v45 = vadd.f32 %v756_v4, %v2460_v61  ;;  %v2478_v46 = vadd.f32 %v757_v5, %v2462_v62 }
 0x109   :  { %v170_v43 = vpop.f32.mrb[5].mxu0  ;;  %v243_v44 = vpop.f32.mrb[5].mxu1 }
 0x10a   :  { %v1854_v47 = vpack.c.bf16 %v170_v43, %v168_v14  ;;  %v172_v48 = vpop.f32.mrb[6].mxu0  ;;  %v1855_v49 = vpack.c.bf16 %v243_v44, %v241_v25  ;;  %v245_v51 = vpop.f32.mrb[6].mxu1 }
 0x10b   :  { %v174_v53 = vpop.f32.mrb[7].mxu0  ;;  %v247_v54 = vpop.f32.mrb[7].mxu1 }
 0x10c   :  { %v876_v55 = vunpack.c.l.bf16 %v1854_v47  ;;  %v877_v56 = vunpack.c.h.bf16 %v1854_v47  ;;  %v1856_v57 = vpack.c.bf16 %v174_v53, %v172_v48  ;;  %v878_v58 = vunpack.c.l.bf16 %v1855_v49 }
 0x10d   :  { %v879_v59 = vunpack.c.h.bf16 %v1855_v49  ;;  %v1857_v60 = vpack.c.bf16 %v247_v54, %v245_v51 }
 0x10e   :  { %v998_v63 = vunpack.c.l.bf16 %v1856_v57  ;;  %v999_v1 = vunpack.c.h.bf16 %v1856_v57  ;;  %v2481_v4 = vadd.f32 %v876_v55, %v2464_v2  ;;  %v2484_v5 = vadd.f32 %v878_v58, %v2460_v61 }
 0x10f   :  { %v1000_v14 = vunpack.c.l.bf16 %v1857_v60  ;;  %v1001_v43 = vunpack.c.h.bf16 %v1857_v60  ;;  %v2487_v25 = vadd.f32 %v877_v56, %v2466_v3  ;;  %v2490_v44 = vadd.f32 %v879_v59, %v2462_v62 }
 0x110   :  { %2908 = vst [vmem:[#allocation14_spill] sm:$0xff] %v2481_v4  ;;  %2909 = vst [vmem:[#allocation15_spill] sm:$0xff] %v2484_v5  ;;  %v178_v47 = vpop.f32.mrb[8].mxu0  ;;  %v251_v48 = vpop.f32.mrb[8].mxu1  ;;  %v2493_v49 = vadd.f32 %v998_v63, %v2464_v2  ;;  %v2496_v51 = vadd.f32 %v999_v1, %v2466_v3 }
 0x111   :  { %2910 = vst [vmem:[#allocation16_spill] sm:$0xff] %v2487_v25  ;;  %2911 = vst [vmem:[#allocation17_spill] sm:$0xff] %v2490_v44  ;;  %v180_v53 = vpop.f32.mrb[9].mxu0  ;;  %v253_v54 = vpop.f32.mrb[9].mxu1  ;;  %v2499_v55 = vadd.f32 %v1000_v14, %v2460_v61  ;;  %v2502_v57 = vadd.f32 %v1001_v43, %v2462_v62 }
 0x112   :  { %2912 = vst [vmem:[#allocation18_spill] sm:$0xff] %v2493_v49  ;;  %2913 = vst [vmem:[#allocation19_spill] sm:$0xff] %v2496_v51  ;;  %v1858_v56 = vpack.c.bf16 %v180_v53, %v178_v47  ;;  %v182_v58 = vpop.f32.mrb[10].mxu0  ;;  %v1859_v59 = vpack.c.bf16 %v253_v54, %v251_v48  ;;  %v255_v60 = vpop.f32.mrb[10].mxu1 }
 0x113   :  { %2914 = vst [vmem:[#allocation20_spill] sm:$0xff] %v2499_v55  ;;  %2915 = vst [vmem:[#allocation21_spill] sm:$0xff] %v2502_v57  ;;  %v184_v42 = vpop.f32.mrb[11].mxu0  ;;  %v257_v0 = vpop.f32.mrb[11].mxu1 }
 0x114   :  { %v1120_v44 = vunpack.c.l.bf16 %v1858_v56  ;;  %v1121_v63 = vunpack.c.h.bf16 %v1858_v56  ;;  %v1860_v49 = vpack.c.bf16 %v184_v42, %v182_v58  ;;  %v1122_v25 = vunpack.c.l.bf16 %v1859_v59 }
 0x115   :  { %v1123_v1 = vunpack.c.h.bf16 %v1859_v59  ;;  %v1861_v51 = vpack.c.bf16 %v257_v0, %v255_v60 }
 0x116   :  { %v1242_v5 = vunpack.c.l.bf16 %v1860_v49  ;;  %v1243_v4 = vunpack.c.h.bf16 %v1860_v49  ;;  %v2505_v14 = vadd.f32 %v1120_v44, %v2464_v2  ;;  %v2508_v43 = vadd.f32 %v1122_v25, %v2460_v61 }
 0x117   :  { %v1244_v47 = vunpack.c.l.bf16 %v1861_v51  ;;  %v1245_v53 = vunpack.c.h.bf16 %v1861_v51  ;;  %v2511_v48 = vadd.f32 %v1121_v63, %v2466_v3  ;;  %v2514_v54 = vadd.f32 %v1123_v1, %v2462_v62 }
 0x118   :  { %2916 = vst [vmem:[#allocation22_spill] sm:$0xff] %v2505_v14  ;;  %2917 = vst [vmem:[#allocation23_spill] sm:$0xff] %v2508_v43  ;;  %v188_v42 = vpop.f32.mrb[12].mxu0  ;;  %v261_v56 = vpop.f32.mrb[12].mxu1  ;;  %v2517_v0 = vadd.f32 %v1242_v5, %v2464_v2  ;;  %v2520_v49 = vadd.f32 %v1243_v4, %v2466_v3  ;;  %v472_v44 = vunpack.c.l.bf16 %v2453_v50  ;;  %v473_v5 = vunpack.c.h.bf16 %v2453_v50 }
 0x119   :  { %2918 = vst [vmem:[#allocation24_spill] sm:$0xff] %v2511_v48  ;;  %2919 = vst [vmem:[#allocation25_spill] sm:$0xff] %v2514_v54  ;;  %v190_v25 = vpop.f32.mrb[13].mxu0  ;;  %v263_v58 = vpop.f32.mrb[13].mxu1  ;;  %v2524_v51 = vadd.f32 %v1244_v47, %v2460_v61  ;;  %v2527_v59 = vadd.f32 %v1245_v53, %v2462_v62  ;;  %v475_v47 = vunpack.c.h.bf16 %v2455_v52 }
 0x11a   :  { %2920 = vst [vmem:[#allocation26_spill] sm:$0xff] %v2517_v0  ;;  %2921 = vst [vmem:[#allocation27_spill] sm:$0xff] %v2520_v49  ;;  %v1862_v60 = vpack.c.bf16 %v190_v25, %v188_v42  ;;  %v192_v63 = vpop.f32.mrb[14].mxu0  ;;  %v1863_v1 = vpack.c.bf16 %v263_v58, %v261_v56  ;;  %v265_v54 = vpop.f32.mrb[14].mxu1  ;;  %v474_v0 = vunpack.c.l.bf16 %v2455_v52  ;;  %v476_v53 = vadd.f32 %v472_v44, %v2464_v2 }
 0x11b   :  { %2922 = vst [vmem:[#allocation28_spill] sm:$0xff] %v2524_v51  ;;  %2923 = vst [vmem:[#allocation29_spill] sm:$0xff] %v2527_v59  ;;  %v194_v4 = vpop.f32.mrb[15].mxu0  ;;  %v267_v49 = vpop.f32.mrb[15].mxu1 }
 0x11c   :  { %v1364_v48 = vunpack.c.l.bf16 %v1862_v60  ;;  %v1365_v43 = vunpack.c.h.bf16 %v1862_v60  ;;  %v1864_v14 = vpack.c.bf16 %v194_v4, %v192_v63  ;;  %v1366_v57 = vunpack.c.l.bf16 %v1863_v1 }
 0x11d   :  { %v1367_v51 = vunpack.c.h.bf16 %v1863_v1  ;;  %v1865_v55 = vpack.c.bf16 %v267_v49, %v265_v54  ;;  %v478_v54 = vadd.f32 %v474_v0, %v2460_v61  ;;  %v477_v49 = vadd.f32 %v473_v5, %v2466_v3 }
 0x11e   :  { %v1486_v42 = vunpack.c.l.bf16 %v1864_v14  ;;  %v1487_v25 = vunpack.c.h.bf16 %v1864_v14  ;;  %v2534_v56 = vadd.f32 %v1364_v48, %v2464_v2  ;;  %v2537_v50 = vadd.f32 %v1366_v57, %v2460_v61 }
 0x11f   :  { %v1488_v58 = vunpack.c.l.bf16 %v1865_v55  ;;  %v1489_v59 = vunpack.c.h.bf16 %v1865_v55  ;;  %v2540_v60 = vadd.f32 %v1365_v43, %v2466_v3  ;;  %v2543_v63 = vadd.f32 %v1367_v51, %v2462_v62 }
 0x120   :  { %v675_v52 = vpop.f32.mrb[16].mxu0  ;;  %v2548_v14 = vadd.f32 %v1486_v42, %v2464_v2  ;;  %v2551_v48 = vadd.f32 %v1487_v25, %v2466_v3  ;;  %v479_v43 = vadd.f32 %v475_v47, %v2462_v62 }
 0x121   :  { %2924 = vst [vmem:[#allocation30_spill] sm:$0xff] %v2543_v63  ;;  %v723_v57 = vadd.f32 %v675_v52, %v476_v53  ;;  %v716_v44 = vpop.f32.mrb[16].mxu1  ;;  %v677_v55 = vpop.f32.mrb[17].mxu0  ;;  %v2555_v1 = vadd.f32 %v1488_v58, %v2460_v61  ;;  %v2558_v51 = vadd.f32 %v1489_v59, %v2462_v62 }
 0x122   :  { %2925 = vst [vmem:[#allocation31_spill] sm:$0xff] %v2548_v14  ;;  %2926 = vst [vmem:[#allocation32_spill] sm:$0xff] %v2551_v48  ;;  %v725_v0 = vadd.f32 %v716_v44, %v478_v54  ;;  %v724_v4 = vadd.f32 %v677_v55, %v477_v49  ;;  %v718_v5 = vpop.f32.mrb[17].mxu1  ;;  %v679_v63 = vpop.f32.mrb[18].mxu0 }
 0x123   :  { %v1817_v2 = vmul.f32 -1.442695, %v723_v57  ;;  %v726_v42 = vadd.f32 %v718_v5, %v479_v43  ;;  %v680_v14 = vpop.f32.mrb[19].mxu0  ;;  %v720_v3 = vpop.f32.mrb[18].mxu1 }
 0x124   :  { %v1818_v25 = vmul.f32 -1.442695, %v724_v4  ;;  %v721_v53 = vpop.f32.mrb[19].mxu1  ;;  %v1819_v52 = vmul.f32 -1.442695, %v725_v0 }
 0x125   :  { %1972 = vpow2.f32 %v1817_v2 }
 0x126   :  { %1974 = vpow2.f32 %v1818_v25 }
 0x127   :  { %1976 = vpow2.f32 %v1819_v52 }
 0x128   :  { %1978 = vtanh.f32 %v726_v42 }
 0x12f   :  { %v1973_v47 = vpop.eup %1972 }
 0x130   :  { %v736_v48 = vadd.f32 1.0, %v1973_v47  ;;  %v1975_v61 = vpop.eup %1974 }
 0x131   :  { %v737_v62 = vadd.f32 1.0, %v1975_v61  ;;  %v1977_v59 = vpop.eup %1976 }
 0x132   :  { %1980 = vrcp.f32 %v736_v48  ;;  %v1979_v58 = vpop.eup %1978  ;;  %v738_v14 = vadd.f32 1.0, %v1977_v59  ;;  %v2927_v48 = vmov 0  }
 0x133   :  { %1982 = vrcp.f32 %v737_v62 }
 0x134   :  { %1984 = vrcp.f32 %v738_v14 }
 0x13c   :  { %v1981_v63 = vpop.eup %1980 }
 0x13d   :  { %v747_v54 = vmul.f32 %v1981_v63, %v1979_v58  ;;  %v1983_v49 = vpop.eup %1982 }
 0x13e   :  { %v746_v57 = vmul.f32 0.0, %v1983_v49  ;;  %v1985_v55 = vpop.eup %1984 }
 0x140   :  { %v2560_v44 = vadd.f32 %v747_v54, %v746_v57 }
 0x142   :  { %1986 = vtanh.f32 %v2560_v44 }
 0x14c   :  { %v1987_v43 = vpop.eup %1986 }
 0x14d   :  { %v750_v0 = vmul.f32 %v1987_v43, %v1985_v55 }
 0x14f   :  { %v762_v4 = vpack.c.bf16 %v750_v0, %v750_v0 }
 0x151   :  { %796 = vmatmul.mubr.bf16.vlgmr.msra.gmra.mrb[20].mxu0 %v762_v4  ;;  %837 = vmatmul.mubr.bf16.vlgmr.msra.gmra.mrb[20].mxu1 %v762_v4 }
 0x152   :  { %886 = vmatpush1.bf16.msra.mxu0 %v2299_v8  ;;  %927 = vmatpush1.bf16.msra.mxu1 %v2302_v9 }
 0x153   :  { %887 = vmatprep.subr.bf16.mxu0 %v2306_v10  ;;  %928 = vmatprep.subr.bf16.mxu1 %v2310_v11 }
 0x154   :  { %917 = vmatprep.mubr.bf16.mxu0 %v2927_v48  ;;  %958 = vmatprep.mubr.bf16.mxu1 %v2927_v48 }
 0x156   :  { %888 = vmatpush1.bf16.msra.mxu0 %v2312_v12  ;;  %929 = vmatpush1.bf16.msra.mxu1 %v2314_v13 }
 0x157   :  { %889 = vmatprep.subr.bf16.mxu0 %v2323_v15  ;;  %930 = vmatprep.subr.bf16.mxu1 %v2326_v16 }
 0x15a   :  { %890 = vmatpush1.bf16.msra.mxu0 %v2329_v17  ;;  %931 = vmatpush1.bf16.msra.mxu1 %v2331_v18 }
 0x15b   :  { %891 = vmatprep.subr.bf16.mxu0 %v2335_v19  ;;  %932 = vmatprep.subr.bf16.mxu1 %v2338_v20 }
 0x15e   :  { %892 = vmatpush1.bf16.msra.mxu0 %v2342_v21  ;;  %933 = vmatpush1.bf16.msra.mxu1 %v2345_v22 }
 0x15f   :  { %893 = vmatprep.subr.bf16.mxu0 %v2350_v23  ;;  %934 = vmatprep.subr.bf16.mxu1 %v2354_v24 }
 0x162   :  { %894 = vmatpush1.bf16.msra.mxu0 %v2360_v26  ;;  %935 = vmatpush1.bf16.msra.mxu1 %v2364_v27 }
 0x163   :  { %895 = vmatprep.subr.bf16.mxu0 %v2366_v28  ;;  %936 = vmatprep.subr.bf16.mxu1 %v2369_v29 }
 0x166   :  { %896 = vmatpush1.bf16.msra.mxu0 %v2374_v30  ;;  %937 = vmatpush1.bf16.msra.mxu1 %v2376_v31 }
 0x167   :  { %897 = vmatprep.subr.bf16.mxu0 %v2384_v33  ;;  %938 = vmatprep.subr.bf16.mxu1 %v2388_v34 }
 0x16a   :  { %898 = vmatpush1.bf16.msra.mxu0 %v2390_v35  ;;  %939 = vmatpush1.bf16.msra.mxu1 %v2392_v36 }
 0x16b   :  { %899 = vmatprep.subr.bf16.mxu0 %v2394_v37  ;;  %940 = vmatprep.subr.bf16.mxu1 %v2397_v38 }
 0x16e   :  { %900 = vmatpush1.bf16.msra.mxu0 %v2402_v39  ;;  %941 = vmatpush1.bf16.msra.mxu1 %v2410_v40 }
 0x16f   :  { %1007 = vmatprep.subr.bf16.mxu0 %v2295_v6  ;;  %1048 = vmatprep.subr.bf16.mxu1 %v2297_v7 }
 0x224   :  { %v797_v5 = vpop.f32.mrb[20].mxu0  ;;  %v838_v2 = vpop.f32.mrb[20].mxu1 }
 0x225   :  { %v845_v42 = vadd.f32 %v797_v5, %v2469_v32  ;;  %v847_v3 = vadd.f32 %v838_v2, %v2475_v45  ;;  %v799_v25 = vpop.f32.mrb[21].mxu0  ;;  %v840_v53 = vpop.f32.mrb[21].mxu1 }
 0x226   :  { %v846_v52 = vadd.f32 %v799_v25, %v2472_v41  ;;  %v848_v47 = vadd.f32 %v840_v53, %v2478_v46  ;;  %v801_v61 = vpop.f32.mrb[22].mxu0  ;;  %v842_v62 = vpop.f32.mrb[22].mxu1 }
 0x227   :  { %v1820_v59 = vmul.f32 -1.442695, %v845_v42  ;;  %v802_v58 = vpop.f32.mrb[23].mxu0  ;;  %v843_v63 = vpop.f32.mrb[23].mxu1  ;;  %v1822_v49 = vmul.f32 -1.442695, %v847_v3 }
 0x228   :  { %v1821_v54 = vmul.f32 -1.442695, %v846_v52  ;;  %v2929_v62 = vld [vmem:[#allocation15_spill] sm:$0xff] }
 0x229   :  { %1988 = vpow2.f32 %v1820_v59 }
 0x22a   :  { %1990 = vpow2.f32 %v1821_v54  ;;  %v2930_v54 = vld [vmem:[#allocation16_spill] sm:$0xff] }
 0x22b   :  { %1992 = vtanh.f32 %v848_v47  ;;  %v2928_v47 = vld [vmem:[#allocation14_spill] sm:$0xff] }
 0x22c   :  { %1994 = vpow2.f32 %v1822_v49 }
 0x233   :  { %v1989_v14 = vpop.eup %1988 }
 0x234   :  { %v858_v57 = vadd.f32 1.0, %v1989_v14  ;;  %v1991_v32 = vpop.eup %1990  ;;  %v2931_v14 = vld [vmem:[#allocation17_spill] sm:$0xff] }
 0x235   :  { %v859_v45 = vadd.f32 1.0, %v1991_v32  ;;  %v1993_v41 = vpop.eup %1992 }
 0x236   :  { %1996 = vrcp.f32 %v858_v57  ;;  %v1995_v55 = vpop.eup %1994 }
 0x237   :  { %1998 = vrcp.f32 %v859_v45  ;;  %v860_v4 = vadd.f32 1.0, %v1995_v55 }
 0x239   :  { %2000 = vrcp.f32 %v860_v4 }
 0x240   :  { %v1997_v46 = vpop.eup %1996 }
 0x241   :  { %v869_v43 = vmul.f32 %v1997_v46, %v1993_v41  ;;  %v1999_v0 = vpop.eup %1998 }
 0x242   :  { %v868_v5 = vmul.f32 %v1999_v0, %v2560_v44 }
 0x243   :  { %v2001_v42 = vpop.eup %2000 }
 0x244   :  { %v2602_v2 = vadd.f32 %v869_v43, %v868_v5 }
 0x246   :  { %2002 = vtanh.f32 %v2602_v2 }
 0x250   :  { %v2003_v3 = vpop.eup %2002 }
 0x251   :  { %v872_v25 = vmul.f32 %v2003_v3, %v2001_v42 }
 0x253   :  { %v884_v53 = vpack.c.bf16 %v872_v25, %v872_v25 }
 0x255   :  { %918 = vmatmul.mubr.bf16.vlgmr.msra.gmra.mrb[24].mxu0 %v884_v53  ;;  %959 = vmatmul.mubr.bf16.vlgmr.msra.gmra.mrb[24].mxu1 %v884_v53 }
 0x256   :  { %1008 = vmatpush1.bf16.msra.mxu0 %v2299_v8  ;;  %1049 = vmatpush1.bf16.msra.mxu1 %v2302_v9 }
 0x257   :  { %1009 = vmatprep.subr.bf16.mxu0 %v2306_v10  ;;  %1050 = vmatprep.subr.bf16.mxu1 %v2310_v11 }
 0x258   :  { %1039 = vmatprep.mubr.bf16.mxu0 %v2927_v48  ;;  %1080 = vmatprep.mubr.bf16.mxu1 %v2927_v48 }
 0x25a   :  { %1010 = vmatpush1.bf16.msra.mxu0 %v2312_v12  ;;  %1051 = vmatpush1.bf16.msra.mxu1 %v2314_v13 }
 0x25b   :  { %1011 = vmatprep.subr.bf16.mxu0 %v2323_v15  ;;  %1052 = vmatprep.subr.bf16.mxu1 %v2326_v16 }
 0x25e   :  { %1012 = vmatpush1.bf16.msra.mxu0 %v2329_v17  ;;  %1053 = vmatpush1.bf16.msra.mxu1 %v2331_v18 }
 0x25f   :  { %1013 = vmatprep.subr.bf16.mxu0 %v2335_v19  ;;  %1054 = vmatprep.subr.bf16.mxu1 %v2338_v20 }
 0x262   :  { %1014 = vmatpush1.bf16.msra.mxu0 %v2342_v21  ;;  %1055 = vmatpush1.bf16.msra.mxu1 %v2345_v22 }
 0x263   :  { %1015 = vmatprep.subr.bf16.mxu0 %v2350_v23  ;;  %1056 = vmatprep.subr.bf16.mxu1 %v2354_v24 }
 0x266   :  { %1016 = vmatpush1.bf16.msra.mxu0 %v2360_v26  ;;  %1057 = vmatpush1.bf16.msra.mxu1 %v2364_v27 }
 0x267   :  { %1017 = vmatprep.subr.bf16.mxu0 %v2366_v28  ;;  %1058 = vmatprep.subr.bf16.mxu1 %v2369_v29 }
 0x26a   :  { %1018 = vmatpush1.bf16.msra.mxu0 %v2374_v30  ;;  %1059 = vmatpush1.bf16.msra.mxu1 %v2376_v31 }
 0x26b   :  { %1019 = vmatprep.subr.bf16.mxu0 %v2384_v33  ;;  %1060 = vmatprep.subr.bf16.mxu1 %v2388_v34 }
 0x26e   :  { %1020 = vmatpush1.bf16.msra.mxu0 %v2390_v35  ;;  %1061 = vmatpush1.bf16.msra.mxu1 %v2392_v36 }
 0x26f   :  { %1021 = vmatprep.subr.bf16.mxu0 %v2394_v37  ;;  %1062 = vmatprep.subr.bf16.mxu1 %v2397_v38 }
 0x272   :  { %1022 = vmatpush1.bf16.msra.mxu0 %v2402_v39  ;;  %1063 = vmatpush1.bf16.msra.mxu1 %v2410_v40 }
 0x273   :  { %1129 = vmatprep.subr.bf16.mxu0 %v2295_v6  ;;  %1170 = vmatprep.subr.bf16.mxu1 %v2297_v7 }
 0x328   :  { %v919_v44 = vpop.f32.mrb[24].mxu0  ;;  %v960_v52 = vpop.f32.mrb[24].mxu1 }
 0x329   :  { %v967_v61 = vadd.f32 %v919_v44, %v2928_v47  ;;  %v969_v59 = vadd.f32 %v960_v52, %v2929_v62  ;;  %v921_v58 = vpop.f32.mrb[25].mxu0  ;;  %v962_v63 = vpop.f32.mrb[25].mxu1 }
 0x32a   :  { %v968_v49 = vadd.f32 %v921_v58, %v2930_v54  ;;  %v970_v57 = vadd.f32 %v962_v63, %v2931_v14  ;;  %v923_v32 = vpop.f32.mrb[26].mxu0  ;;  %v964_v45 = vpop.f32.mrb[26].mxu1 }
 0x32b   :  { %v1823_v41 = vmul.f32 -1.442695, %v967_v61  ;;  %v924_v55 = vpop.f32.mrb[27].mxu0  ;;  %v965_v46 = vpop.f32.mrb[27].mxu1  ;;  %v1825_v7 = vmul.f32 -1.442695, %v969_v59 }
 0x32c   :  { %v1824_v6 = vmul.f32 -1.442695, %v968_v49 }
 0x32d   :  { %2004 = vpow2.f32 %v1823_v41 }
 0x32e   :  { %2006 = vpow2.f32 %v1824_v6 }
 0x32f   :  { %2008 = vtanh.f32 %v970_v57 }
 0x330   :  { %2010 = vpow2.f32 %v1825_v7 }
 0x337   :  { %v2005_v43 = vpop.eup %2004 }
 0x338   :  { %v980_v0 = vadd.f32 1.0, %v2005_v43  ;;  %v2007_v4 = vpop.eup %2006 }
 0x339   :  { %v981_v5 = vadd.f32 1.0, %v2007_v4  ;;  %v2009_v42 = vpop.eup %2008 }
 0x33a   :  { %2012 = vrcp.f32 %v980_v0  ;;  %v2011_v3 = vpop.eup %2010 }
 0x33b   :  { %2014 = vrcp.f32 %v981_v5  ;;  %v982_v52 = vadd.f32 1.0, %v2011_v3 }
 0x33d   :  { %2016 = vrcp.f32 %v982_v52  ;;  %v2696_v52 = vld [vmem:[#allocation5 + $0x8] ss:$16 sps:$4 sm:$0xff]  }
 0x344   :  { %v2013_v25 = vpop.eup %2012 }
 0x345   :  { %v991_v53 = vmul.f32 %v2013_v25, %v2009_v42  ;;  %v2015_v44 = vpop.eup %2014 }
 0x346   :  { %v990_v47 = vmul.f32 %v2015_v44, %v2602_v2  ;;  %v2693_v44 = vld [vmem:[#allocation5] ss:$16 sps:$4 sm:$0xff]  }
 0x347   :  { %v2017_v62 = vpop.eup %2016 }
 0x348   :  { %v2644_v61 = vadd.f32 %v991_v53, %v990_v47  ;;  %v2699_v47 = vld [vmem:[#allocation5 + $0x24] ss:$16 sps:$4 sm:$0xff]  }
 0x34a   :  { %2018 = vtanh.f32 %v2644_v61 }
 0x354   :  { %v2019_v59 = vpop.eup %2018 }
 0x355   :  { %v994_v58 = vmul.f32 %v2019_v59, %v2017_v62  ;;  %v2707_v62 = vld [vmem:[#allocation5 + $0x20] ss:$16 sps:$4 sm:$0xff]   ;;  %v2710_v59 = vld [vmem:[#allocation5 + $0x28] ss:$16 sps:$4 sm:$0xff]  }
 0x357   :  { %v1006_v63 = vpack.c.bf16 %v994_v58, %v994_v58  ;;  %v2713_v58 = vld [vmem:[#allocation5 + $0x44] ss:$16 sps:$4 sm:$0xff]  }
 0x359   :  { %1040 = vmatmul.mubr.bf16.vlgmr.msra.gmra.mrb[28].mxu0 %v1006_v63  ;;  %1081 = vmatmul.mubr.bf16.vlgmr.msra.gmra.mrb[28].mxu1 %v1006_v63  ;;  %v2716_v63 = vld [vmem:[#allocation5 + $0x4c] ss:$16 sps:$4 sm:$0xff]  }
 0x35a   :  { %1130 = vmatpush1.bf16.msra.mxu0 %v2299_v8  ;;  %1171 = vmatpush1.bf16.msra.mxu1 %v2302_v9  ;;  %v2679_v8 = vld [vmem:[#allocation5 + $0x4] ss:$16 sps:$4 sm:$0xff]   ;;  %v2682_v9 = vld [vmem:[#allocation5 + $0xc] ss:$16 sps:$4 sm:$0xff]  }
 0x35b   :  { %1131 = vmatprep.subr.bf16.mxu0 %v2306_v10  ;;  %1172 = vmatprep.subr.bf16.mxu1 %v2310_v11 }
 0x35c   :  { %1161 = vmatprep.mubr.bf16.mxu0 %v2927_v48  ;;  %1202 = vmatprep.mubr.bf16.mxu1 %v2927_v48 }
 0x35e   :  { %1132 = vmatpush1.bf16.msra.mxu0 %v2312_v12  ;;  %1173 = vmatpush1.bf16.msra.mxu1 %v2314_v13  ;;  %v2932_v12 = vld [vmem:[#allocation18_spill] sm:$0xff] }
 0x35f   :  { %1133 = vmatprep.subr.bf16.mxu0 %v2323_v15  ;;  %1174 = vmatprep.subr.bf16.mxu1 %v2326_v16  ;;  %v2933_v15 = vld [vmem:[#allocation20_spill] sm:$0xff] }
 0x362   :  { %1134 = vmatpush1.bf16.msra.mxu0 %v2329_v17  ;;  %1175 = vmatpush1.bf16.msra.mxu1 %v2331_v18 }
 0x363   :  { %1135 = vmatprep.subr.bf16.mxu0 %v2335_v19  ;;  %1176 = vmatprep.subr.bf16.mxu1 %v2338_v20  ;;  %v2934_v19 = vld [vmem:[#allocation19_spill] sm:$0xff] }
 0x366   :  { %1136 = vmatpush1.bf16.msra.mxu0 %v2342_v21  ;;  %1177 = vmatpush1.bf16.msra.mxu1 %v2345_v22  ;;  %v2935_v21 = vld [vmem:[#allocation21_spill] sm:$0xff] }
 0x367   :  { %1137 = vmatprep.subr.bf16.mxu0 %v2350_v23  ;;  %1178 = vmatprep.subr.bf16.mxu1 %v2354_v24 }
 0x36a   :  { %1138 = vmatpush1.bf16.msra.mxu0 %v2360_v26  ;;  %1179 = vmatpush1.bf16.msra.mxu1 %v2364_v27 }
 0x36b   :  { %1139 = vmatprep.subr.bf16.mxu0 %v2366_v28  ;;  %1180 = vmatprep.subr.bf16.mxu1 %v2369_v29 }
 0x36e   :  { %1140 = vmatpush1.bf16.msra.mxu0 %v2374_v30  ;;  %1181 = vmatpush1.bf16.msra.mxu1 %v2376_v31 }
 0x36f   :  { %1141 = vmatprep.subr.bf16.mxu0 %v2384_v33  ;;  %1182 = vmatprep.subr.bf16.mxu1 %v2388_v34 }
 0x372   :  { %1142 = vmatpush1.bf16.msra.mxu0 %v2390_v35  ;;  %1183 = vmatpush1.bf16.msra.mxu1 %v2392_v36 }
 0x373   :  { %1143 = vmatprep.subr.bf16.mxu0 %v2394_v37  ;;  %1184 = vmatprep.subr.bf16.mxu1 %v2397_v38 }
 0x376   :  { %1144 = vmatpush1.bf16.msra.mxu0 %v2402_v39  ;;  %1185 = vmatpush1.bf16.msra.mxu1 %v2410_v40 }
 0x377   :  { %1251 = vmatprep.subr.bf16.mxu0 %v2679_v8  ;;  %1292 = vmatprep.subr.bf16.mxu1 %v2682_v9 }
 0x42c   :  { %v1041_v10 = vpop.f32.mrb[28].mxu0  ;;  %v1082_v11 = vpop.f32.mrb[28].mxu1 }
 0x42d   :  { %v1089_v13 = vadd.f32 %v1041_v10, %v2932_v12  ;;  %v1091_v16 = vadd.f32 %v1082_v11, %v2933_v15  ;;  %v1043_v17 = vpop.f32.mrb[29].mxu0  ;;  %v1084_v18 = vpop.f32.mrb[29].mxu1  ;;  %v2719_v10 = vld [vmem:[#allocation5 + $0x40] ss:$16 sps:$4 sm:$0xff]   ;;  %v2722_v11 = vld [vmem:[#allocation5 + $0x48] ss:$16 sps:$4 sm:$0xff]  }
 0x42e   :  { %v1090_v20 = vadd.f32 %v1043_v17, %v2934_v19  ;;  %v1092_v22 = vadd.f32 %v1084_v18, %v2935_v21  ;;  %v1045_v23 = vpop.f32.mrb[30].mxu0  ;;  %v1086_v24 = vpop.f32.mrb[30].mxu1  ;;  %v2725_v12 = vld [vmem:[#allocation5 + $0x64] ss:$16 sps:$4 sm:$0xff]   ;;  %v2731_v15 = vld [vmem:[#allocation5 + $0x60] ss:$16 sps:$4 sm:$0xff]  }
 0x42f   :  { %v1826_v26 = vmul.f32 -1.442695, %v1089_v13  ;;  %v1046_v2 = vpop.f32.mrb[31].mxu0  ;;  %v1087_v54 = vpop.f32.mrb[31].mxu1  ;;  %v1828_v14 = vmul.f32 -1.442695, %v1091_v16 }
 0x430   :  { %v1827_v49 = vmul.f32 -1.442695, %v1090_v20  ;;  %v2728_v13 = vld [vmem:[#allocation5 + $0x6c] ss:$16 sps:$4 sm:$0xff]   ;;  %v2734_v16 = vld [vmem:[#allocation5 + $0x68] ss:$16 sps:$4 sm:$0xff]  }
 0x431   :  { %2020 = vpow2.f32 %v1826_v26  ;;  %v2737_v17 = vld [vmem:[#allocation5 + $0x84] ss:$16 sps:$4 sm:$0xff]   ;;  %v2740_v18 = vld [vmem:[#allocation5 + $0x8c] ss:$16 sps:$4 sm:$0xff]   ;;  %v2743_v19 = vld [vmem:[#allocation5 + $0x80] ss:$16 sps:$4 sm:$0xff]  }
 0x432   :  { %2022 = vpow2.f32 %v1827_v49  ;;  %v2939_v20 = vld [vmem:[#allocation25_spill] sm:$0xff] }
 0x433   :  { %2024 = vtanh.f32 %v1092_v22 }
 0x434   :  { %2026 = vpow2.f32 %v1828_v14 }
 0x43b   :  { %v2021_v57 = vpop.eup %2020 }
 0x43c   :  { %v1102_v32 = vadd.f32 1.0, %v2021_v57  ;;  %v2023_v45 = vpop.eup %2022 }
 0x43d   :  { %v1103_v41 = vadd.f32 1.0, %v2023_v45  ;;  %v2025_v55 = vpop.eup %2024 }
 0x43e   :  { %2028 = vrcp.f32 %v1102_v32  ;;  %v2027_v46 = vpop.eup %2026 }
 0x43f   :  { %2030 = vrcp.f32 %v1103_v41  ;;  %v1104_v0 = vadd.f32 1.0, %v2027_v46 }
 0x441   :  { %2032 = vrcp.f32 %v1104_v0 }
 0x448   :  { %v2029_v6 = vpop.eup %2028 }
 0x449   :  { %v1113_v7 = vmul.f32 %v2029_v6, %v2025_v55  ;;  %v2031_v43 = vpop.eup %2030 }
 0x44a   :  { %v1112_v4 = vmul.f32 %v2031_v43, %v2644_v61  ;;  %v2702_v61 = vld [vmem:[#allocation5 + $0x2c] ss:$16 sps:$4 sm:$0xff]  }
 0x44b   :  { %v2033_v42 = vpop.eup %2032 }
 0x44c   :  { %v2690_v5 = vadd.f32 %v1113_v7, %v1112_v4 }
 0x44e   :  { %2034 = vtanh.f32 %v2690_v5 }
 0x458   :  { %v2035_v3 = vpop.eup %2034 }
 0x459   :  { %v1116_v25 = vmul.f32 %v2035_v3, %v2033_v42  ;;  %v2791_v3 = vld [vmem:[#allocation5 + $0xa4] ss:$16 sps:$4 sm:$0xff]  }
 0x45b   :  { %v1128_v53 = vpack.c.bf16 %v1116_v25, %v1116_v25  ;;  %v2794_v25 = vld [vmem:[#allocation5 + $0xac] ss:$16 sps:$4 sm:$0xff]  }
 0x45d   :  { %1162 = vmatmul.mubr.bf16.vlgmr.msra.gmra.mrb[32].mxu0 %v1128_v53  ;;  %1203 = vmatmul.mubr.bf16.vlgmr.msra.gmra.mrb[32].mxu1 %v1128_v53  ;;  %v2797_v53 = vld [vmem:[#allocation5 + $0xa0] ss:$16 sps:$4 sm:$0xff]  }
 0x45e   :  { %1252 = vmatpush1.bf16.msra.mxu0 %v2693_v44  ;;  %1293 = vmatpush1.bf16.msra.mxu1 %v2696_v52 }
 0x45f   :  { %1253 = vmatprep.subr.bf16.mxu0 %v2699_v47  ;;  %1294 = vmatprep.subr.bf16.mxu1 %v2702_v61 }
 0x460   :  { %1283 = vmatprep.mubr.bf16.mxu0 %v2927_v48  ;;  %1324 = vmatprep.mubr.bf16.mxu1 %v2927_v48 }
 0x462   :  { %1254 = vmatpush1.bf16.msra.mxu0 %v2707_v62  ;;  %1295 = vmatpush1.bf16.msra.mxu1 %v2710_v59 }
 0x463   :  { %1255 = vmatprep.subr.bf16.mxu0 %v2713_v58  ;;  %1296 = vmatprep.subr.bf16.mxu1 %v2716_v63 }
 0x466   :  { %1256 = vmatpush1.bf16.msra.mxu0 %v2719_v10  ;;  %1297 = vmatpush1.bf16.msra.mxu1 %v2722_v11 }
 0x467   :  { %1257 = vmatprep.subr.bf16.mxu0 %v2725_v12  ;;  %1298 = vmatprep.subr.bf16.mxu1 %v2728_v13 }
 0x46a   :  { %1258 = vmatpush1.bf16.msra.mxu0 %v2731_v15  ;;  %1299 = vmatpush1.bf16.msra.mxu1 %v2734_v16 }
 0x46b   :  { %1259 = vmatprep.subr.bf16.mxu0 %v2737_v17  ;;  %1300 = vmatprep.subr.bf16.mxu1 %v2740_v18 }
 0x46e   :  { %1260 = vmatpush1.bf16.msra.mxu0 %v2743_v19  ;;  %1301 = vmatpush1.bf16.msra.mxu1 %v2364_v27 }
 0x46f   :  { %1261 = vmatprep.subr.bf16.mxu0 %v2366_v28  ;;  %1302 = vmatprep.subr.bf16.mxu1 %v2369_v29  ;;  %v2936_v29 = vld [vmem:[#allocation22_spill] sm:$0xff] }
 0x472   :  { %1262 = vmatpush1.bf16.msra.mxu0 %v2374_v30  ;;  %1303 = vmatpush1.bf16.msra.mxu1 %v2376_v31  ;;  %v2937_v31 = vld [vmem:[#allocation23_spill] sm:$0xff] }
 0x473   :  { %1263 = vmatprep.subr.bf16.mxu0 %v2384_v33  ;;  %1304 = vmatprep.subr.bf16.mxu1 %v2388_v34 }
 0x476   :  { %1264 = vmatpush1.bf16.msra.mxu0 %v2390_v35  ;;  %1305 = vmatpush1.bf16.msra.mxu1 %v2392_v36  ;;  %v2938_v36 = vld [vmem:[#allocation24_spill] sm:$0xff] }
 0x477   :  { %1265 = vmatprep.subr.bf16.mxu0 %v2394_v37  ;;  %1306 = vmatprep.subr.bf16.mxu1 %v2397_v38 }
 0x47a   :  { %1266 = vmatpush1.bf16.msra.mxu0 %v2402_v39  ;;  %1307 = vmatpush1.bf16.msra.mxu1 %v2410_v40 }
 0x47b   :  { %1373 = vmatprep.subr.bf16.mxu0 %v2679_v8  ;;  %1414 = vmatprep.subr.bf16.mxu1 %v2682_v9 }
 0x530   :  { %v1163_v27 = vpop.f32.mrb[32].mxu0  ;;  %v1204_v28 = vpop.f32.mrb[32].mxu1 }
 0x531   :  { %v1211_v30 = vadd.f32 %v1163_v27, %v2936_v29  ;;  %v1213_v33 = vadd.f32 %v1204_v28, %v2937_v31  ;;  %v1165_v34 = vpop.f32.mrb[33].mxu0  ;;  %v1206_v35 = vpop.f32.mrb[33].mxu1  ;;  %v2800_v27 = vld [vmem:[#allocation5 + $0xa8] ss:$16 sps:$4 sm:$0xff]   ;;  %v2803_v28 = vld [vmem:[#allocation5 + $0xc4] ss:$16 sps:$4 sm:$0xff]  }
 0x532   :  { %v1212_v37 = vadd.f32 %v1165_v34, %v2938_v36  ;;  %v1214_v38 = vadd.f32 %v1206_v35, %v2939_v20  ;;  %v1167_v21 = vpop.f32.mrb[34].mxu0  ;;  %v1208_v39 = vpop.f32.mrb[34].mxu1  ;;  %v2806_v29 = vld [vmem:[#allocation5 + $0xcc] ss:$16 sps:$4 sm:$0xff]   ;;  %v2812_v31 = vld [vmem:[#allocation5 + $0xc8] ss:$16 sps:$4 sm:$0xff]  }
 0x533   :  { %v1829_v22 = vmul.f32 -1.442695, %v1211_v30  ;;  %v1168_v40 = vpop.f32.mrb[35].mxu0  ;;  %v1209_v23 = vpop.f32.mrb[35].mxu1  ;;  %v1831_v26 = vmul.f32 -1.442695, %v1213_v33 }
 0x534   :  { %v1830_v24 = vmul.f32 -1.442695, %v1212_v37  ;;  %v2809_v30 = vld [vmem:[#allocation5 + $0xc0] ss:$16 sps:$4 sm:$0xff]   ;;  %v2815_v33 = vld [vmem:[#allocation5 + $0xe4] ss:$16 sps:$4 sm:$0xff]  }
 0x535   :  { %2036 = vpow2.f32 %v1829_v22  ;;  %v2818_v34 = vld [vmem:[#allocation5 + $0xec] ss:$16 sps:$4 sm:$0xff]   ;;  %v2821_v35 = vld [vmem:[#allocation5 + $0xe0] ss:$16 sps:$4 sm:$0xff]   ;;  %v2824_v36 = vld [vmem:[#allocation5 + $0xe8] ss:$16 sps:$4 sm:$0xff]  }
 0x536   :  { %2038 = vpow2.f32 %v1830_v24  ;;  %v2941_v39 = vld [vmem:[#allocation28_spill] sm:$0xff]  ;;  %v2942_v24 = vld [vmem:[#allocation27_spill] sm:$0xff] }
 0x537   :  { %2040 = vtanh.f32 %v1214_v38  ;;  %v2940_v38 = vld [vmem:[#allocation26_spill] sm:$0xff] }
 0x538   :  { %2042 = vpow2.f32 %v1831_v26 }
 0x53f   :  { %v2037_v2 = vpop.eup %2036 }
 0x540   :  { %v1224_v54 = vadd.f32 1.0, %v2037_v2  ;;  %v2039_v49 = vpop.eup %2038  ;;  %v2943_v2 = vld [vmem:[#allocation29_spill] sm:$0xff] }
 0x541   :  { %v1225_v14 = vadd.f32 1.0, %v2039_v49  ;;  %v2041_v57 = vpop.eup %2040 }
 0x542   :  { %2044 = vrcp.f32 %v1224_v54  ;;  %v2043_v32 = vpop.eup %2042 }
 0x543   :  { %2046 = vrcp.f32 %v1225_v14  ;;  %v1226_v46 = vadd.f32 1.0, %v2043_v32 }
 0x545   :  { %2048 = vrcp.f32 %v1226_v46 }
 0x54c   :  { %v2045_v45 = vpop.eup %2044 }
 0x54d   :  { %v1235_v41 = vmul.f32 %v2045_v45, %v2041_v57  ;;  %v2047_v55 = vpop.eup %2046 }
 0x54e   :  { %v1234_v6 = vmul.f32 %v2047_v55, %v2690_v5  ;;  %v2788_v5 = vld [vmem:[#allocation5 + $0x88] ss:$16 sps:$4 sm:$0xff]  }
 0x54f   :  { %v2049_v43 = vpop.eup %2048 }
 0x550   :  { %v2766_v7 = vadd.f32 %v1235_v41, %v1234_v6 }
 0x552   :  { %2050 = vtanh.f32 %v2766_v7 }
 0x55c   :  { %v2051_v0 = vpop.eup %2050 }
 0x55d   :  { %v1238_v4 = vmul.f32 %v2051_v0, %v2049_v43 }
 0x55f   :  { %v1250_v42 = vpack.c.bf16 %v1238_v4, %v1238_v4 }
 0x561   :  { %1284 = vmatmul.mubr.bf16.vlgmr.msra.gmra.mrb[36].mxu0 %v1250_v42  ;;  %1325 = vmatmul.mubr.bf16.vlgmr.msra.gmra.mrb[36].mxu1 %v1250_v42 }
 0x562   :  { %1374 = vmatpush1.bf16.msra.mxu0 %v2693_v44  ;;  %1415 = vmatpush1.bf16.msra.mxu1 %v2696_v52 }
 0x563   :  { %1375 = vmatprep.subr.bf16.mxu0 %v2699_v47  ;;  %1416 = vmatprep.subr.bf16.mxu1 %v2702_v61 }
 0x564   :  { %1405 = vmatprep.mubr.bf16.mxu0 %v2927_v48  ;;  %1446 = vmatprep.mubr.bf16.mxu1 %v2927_v48 }
 0x566   :  { %1376 = vmatpush1.bf16.msra.mxu0 %v2707_v62  ;;  %1417 = vmatpush1.bf16.msra.mxu1 %v2710_v59 }
 0x567   :  { %1377 = vmatprep.subr.bf16.mxu0 %v2713_v58  ;;  %1418 = vmatprep.subr.bf16.mxu1 %v2716_v63 }
 0x56a   :  { %1378 = vmatpush1.bf16.msra.mxu0 %v2719_v10  ;;  %1419 = vmatpush1.bf16.msra.mxu1 %v2722_v11 }
 0x56b   :  { %1379 = vmatprep.subr.bf16.mxu0 %v2725_v12  ;;  %1420 = vmatprep.subr.bf16.mxu1 %v2728_v13 }
 0x56e   :  { %1380 = vmatpush1.bf16.msra.mxu0 %v2731_v15  ;;  %1421 = vmatpush1.bf16.msra.mxu1 %v2734_v16 }
 0x56f   :  { %1381 = vmatprep.subr.bf16.mxu0 %v2737_v17  ;;  %1422 = vmatprep.subr.bf16.mxu1 %v2740_v18 }
 0x572   :  { %1382 = vmatpush1.bf16.msra.mxu0 %v2743_v19  ;;  %1423 = vmatpush1.bf16.msra.mxu1 %v2788_v5 }
 0x573   :  { %1383 = vmatprep.subr.bf16.mxu0 %v2791_v3  ;;  %1424 = vmatprep.subr.bf16.mxu1 %v2794_v25 }
 0x576   :  { %1384 = vmatpush1.bf16.msra.mxu0 %v2797_v53  ;;  %1425 = vmatpush1.bf16.msra.mxu1 %v2800_v27 }
 0x577   :  { %1385 = vmatprep.subr.bf16.mxu0 %v2803_v28  ;;  %1426 = vmatprep.subr.bf16.mxu1 %v2806_v29 }
 0x57a   :  { %1386 = vmatpush1.bf16.msra.mxu0 %v2809_v30  ;;  %1427 = vmatpush1.bf16.msra.mxu1 %v2812_v31 }
 0x57b   :  { %1387 = vmatprep.subr.bf16.mxu0 %v2815_v33  ;;  %1428 = vmatprep.subr.bf16.mxu1 %v2818_v34 }
 0x57e   :  { %1388 = vmatpush1.bf16.msra.mxu0 %v2821_v35  ;;  %1429 = vmatpush1.bf16.msra.mxu1 %v2824_v36 }
 0x57f   :  { %1495 = vmatprep.subr.bf16.mxu0 %v2679_v8  ;;  %1536 = vmatprep.subr.bf16.mxu1 %v2682_v9 }
 0x634   :  { %v1285_v37 = vpop.f32.mrb[36].mxu0  ;;  %v1326_v20 = vpop.f32.mrb[36].mxu1 }
 0x635   :  { %v1333_v21 = vadd.f32 %v1285_v37, %v2940_v38  ;;  %v1335_v22 = vadd.f32 %v1326_v20, %v2941_v39  ;;  %v1287_v40 = vpop.f32.mrb[37].mxu0  ;;  %v1328_v23 = vpop.f32.mrb[37].mxu1 }
 0x636   :  { %v1334_v26 = vadd.f32 %v1287_v40, %v2942_v24  ;;  %v1336_v54 = vadd.f32 %v1328_v23, %v2943_v2  ;;  %v1289_v49 = vpop.f32.mrb[38].mxu0  ;;  %v1330_v14 = vpop.f32.mrb[38].mxu1  ;;  %v1966_v24 = vld [vmem:[#allocation8 + $0x10] sm:$0xff]   ;;  %v1968_v2 = vld [vmem:[#allocation8 + $0x20] sm:$0xff]  }
 0x637   :  { %v1832_v57 = vmul.f32 -1.442695, %v1333_v21  ;;  %v1290_v32 = vpop.f32.mrb[39].mxu0  ;;  %v1331_v45 = vpop.f32.mrb[39].mxu1  ;;  %v1834_v9 = vmul.f32 -1.442695, %v1335_v22 }
 0x638   :  { %v1833_v8 = vmul.f32 -1.442695, %v1334_v26  ;;  %v1967_v26 = vld [vmem:[#allocation8 + $0x18] sm:$0xff]   ;;  %v1970_v49 = vld [vmem:[#allocation8 + $0x30] sm:$0xff]  }
 0x639   :  { %2052 = vpow2.f32 %v1832_v57  ;;  %v1971_v14 = vld [vmem:[#allocation8 + $0x38] sm:$0xff]   ;;  %v2945_v45 = vld [vmem:[#allocation31_spill] sm:$0xff] }
 0x63a   :  { %2054 = vpow2.f32 %v1833_v8 }
 0x63b   :  { %2056 = vtanh.f32 %v1336_v54  ;;  %v1969_v54 = vld [vmem:[#allocation8 + $0x28] sm:$0xff]  }
 0x63c   :  { %2058 = vpow2.f32 %v1834_v9 }
 0x643   :  { %v2053_v41 = vpop.eup %2052 }
 0x644   :  { %v1346_v55 = vadd.f32 1.0, %v2053_v41  ;;  %v2055_v46 = vpop.eup %2054 }
 0x645   :  { %v1347_v6 = vadd.f32 1.0, %v2055_v46  ;;  %v2057_v43 = vpop.eup %2056  ;;  %v2946_v46 = vld [vmem:[#allocation32_spill] sm:$0xff] }
 0x646   :  { %2060 = vrcp.f32 %v1346_v55  ;;  %v2059_v0 = vpop.eup %2058 }
 0x647   :  { %2062 = vrcp.f32 %v1347_v6  ;;  %v1348_v20 = vadd.f32 1.0, %v2059_v0 }
 0x649   :  { %2064 = vrcp.f32 %v1348_v20 }
 0x650   :  { %v2061_v4 = vpop.eup %2060 }
 0x651   :  { %v1357_v42 = vmul.f32 %v2061_v4, %v2057_v43  ;;  %v2063_v37 = vpop.eup %2062 }
 0x652   :  { %v1356_v38 = vmul.f32 %v2063_v37, %v2766_v7 }
 0x653   :  { %v2065_v39 = vpop.eup %2064 }
 0x654   :  { %v2834_v21 = vadd.f32 %v1357_v42, %v1356_v38 }
 0x656   :  { %2066 = vtanh.f32 %v2834_v21 }
 0x660   :  { %v2067_v22 = vpop.eup %2066 }
 0x661   :  { %v1360_v40 = vmul.f32 %v2067_v22, %v2065_v39 }
 0x663   :  { %v1372_v23 = vpack.c.bf16 %v1360_v40, %v1360_v40 }
 0x665   :  { %1406 = vmatmul.mubr.bf16.vlgmr.msra.gmra.mrb[40].mxu0 %v1372_v23  ;;  %1447 = vmatmul.mubr.bf16.vlgmr.msra.gmra.mrb[40].mxu1 %v1372_v23 }
 0x666   :  { %1496 = vmatpush1.bf16.msra.mxu0 %v2693_v44  ;;  %1537 = vmatpush1.bf16.msra.mxu1 %v2696_v52 }
 0x667   :  { %1497 = vmatprep.subr.bf16.mxu0 %v2699_v47  ;;  %1538 = vmatprep.subr.bf16.mxu1 %v2702_v61 }
 0x668   :  { %1527 = vmatprep.mubr.bf16.mxu0 %v2927_v48  ;;  %1568 = vmatprep.mubr.bf16.mxu1 %v2927_v48 }
 0x66a   :  { %1498 = vmatpush1.bf16.msra.mxu0 %v2707_v62  ;;  %1539 = vmatpush1.bf16.msra.mxu1 %v2710_v59 }
 0x66b   :  { %1499 = vmatprep.subr.bf16.mxu0 %v2713_v58  ;;  %1540 = vmatprep.subr.bf16.mxu1 %v2716_v63  ;;  %v2944_v58 = vld [vmem:[#allocation30_spill] sm:$0xff] }
 0x66e   :  { %1500 = vmatpush1.bf16.msra.mxu0 %v2719_v10  ;;  %1541 = vmatpush1.bf16.msra.mxu1 %v2722_v11 }
 0x66f   :  { %1501 = vmatprep.subr.bf16.mxu0 %v2725_v12  ;;  %1542 = vmatprep.subr.bf16.mxu1 %v2728_v13 }
 0x672   :  { %1502 = vmatpush1.bf16.msra.mxu0 %v2731_v15  ;;  %1543 = vmatpush1.bf16.msra.mxu1 %v2734_v16 }
 0x673   :  { %1503 = vmatprep.subr.bf16.mxu0 %v2737_v17  ;;  %1544 = vmatprep.subr.bf16.mxu1 %v2740_v18 }
 0x676   :  { %1504 = vmatpush1.bf16.msra.mxu0 %v2743_v19  ;;  %1545 = vmatpush1.bf16.msra.mxu1 %v2788_v5 }
 0x677   :  { %1505 = vmatprep.subr.bf16.mxu0 %v2791_v3  ;;  %1546 = vmatprep.subr.bf16.mxu1 %v2794_v25 }
 0x67a   :  { %1506 = vmatpush1.bf16.msra.mxu0 %v2797_v53  ;;  %1547 = vmatpush1.bf16.msra.mxu1 %v2800_v27 }
 0x67b   :  { %1507 = vmatprep.subr.bf16.mxu0 %v2803_v28  ;;  %1548 = vmatprep.subr.bf16.mxu1 %v2806_v29 }
 0x67e   :  { %1508 = vmatpush1.bf16.msra.mxu0 %v2809_v30  ;;  %1549 = vmatpush1.bf16.msra.mxu1 %v2812_v31 }
 0x67f   :  { %1509 = vmatprep.subr.bf16.mxu0 %v2815_v33  ;;  %1550 = vmatprep.subr.bf16.mxu1 %v2818_v34  ;;  %v1964_v34 = vld [vmem:[#allocation8] sm:$0xff]  }
 0x682   :  { %1510 = vmatpush1.bf16.msra.mxu0 %v2821_v35  ;;  %1551 = vmatpush1.bf16.msra.mxu1 %v2824_v36  ;;  %v2216_v35 = vmov 0.0   ;;  %v1965_v36 = vld [vmem:[#allocation8 + $0x8] sm:$0xff]  }
 0x683   :  { %1875 = vmatprep.subr.bf16.mxu0 %v2216_v35 }
 0x738   :  { %v1407_v48 = vpop.f32.mrb[40].mxu0  ;;  %v1448_v44 = vpop.f32.mrb[40].mxu1 }
 0x739   :  { %v1455_v52 = vadd.f32 %v1407_v48, %v2534_v56  ;;  %v1457_v47 = vadd.f32 %v1448_v44, %v2537_v50  ;;  %v1409_v61 = vpop.f32.mrb[41].mxu0  ;;  %v1450_v62 = vpop.f32.mrb[41].mxu1 }
 0x73a   :  { %v1456_v59 = vadd.f32 %v1409_v61, %v2540_v60  ;;  %v1458_v63 = vadd.f32 %v1450_v62, %v2944_v58  ;;  %v1411_v10 = vpop.f32.mrb[42].mxu0  ;;  %v1452_v11 = vpop.f32.mrb[42].mxu1 }
 0x73b   :  { %v1835_v12 = vmul.f32 -1.442695, %v1455_v52  ;;  %v1412_v13 = vpop.f32.mrb[43].mxu0  ;;  %v1453_v15 = vpop.f32.mrb[43].mxu1  ;;  %v1837_v17 = vmul.f32 -1.442695, %v1457_v47  ;;  %v2947_v11 = vlaneseq }
 0x73c   :  { %v1836_v16 = vmul.f32 -1.442695, %v1456_v59  ;;  %v1841_v13 = vld [vmem:[%s2903_s5] ss:$0 sm:$0xff]  ;;  %s2180_s5 = scalar_lea.vmem %s1744_s17, 128 }
 0x73d   :  { %2068 = vpow2.f32 %v1835_v12  ;;  %v1723_v12 = vand.u32 127, %v2947_v11  ;;  %p2181_p2 = scmp.ne.s32.totalorder %s1744_s17, %s2180_s5  ;;  %p2186_p4 = scmp.lt.s32.totalorder %s2180_s5, %s2180_s5 }
 0x73e   :  { %2070 = vpow2.f32 %v1836_v16 }
 0x73f   :  { %2072 = vtanh.f32 %v1458_v63  ;;  %vm1724_vm2 = vcmp.lt.s32.totalorder %v1723_v12, 4  ;;  %p2187_p5 = por %p2186_p4, %p2185_p3 }
 0x740   :  { %2074 = vpow2.f32 %v1837_v17 }
 0x741   :  { %p2188_p6 = pnand %p2187_p5, %p2181_p2 }
 0x747   :  { %v2069_v18 = vpop.eup %2068 }
 0x748   :  { %v1468_v19 = vadd.f32 1.0, %v2069_v18  ;;  %v2071_v56 = vpop.eup %2070 }
 0x749   :  { %v1469_v50 = vadd.f32 1.0, %v2071_v56  ;;  %v2073_v60 = vpop.eup %2072 }
 0x74a   :  { %2076 = vrcp.f32 %v1468_v19  ;;  %v2075_v7 = vpop.eup %2074 }
 0x74b   :  { %2078 = vrcp.f32 %v1469_v50  ;;  %v1470_v53 = vadd.f32 1.0, %v2075_v7 }
 0x74d   :  { %2080 = vrcp.f32 %v1470_v53 }
 0x754   :  { %v2077_v5 = vpop.eup %2076 }
 0x755   :  { %v1479_v3 = vmul.f32 %v2077_v5, %v2073_v60  ;;  %v2079_v25 = vpop.eup %2078 }
 0x756   :  { %v1478_v27 = vmul.f32 %v2079_v25, %v2834_v21 }
 0x757   :  { %v2081_v29 = vpop.eup %2080 }
 0x758   :  { %v2874_v28 = vadd.f32 %v1479_v3, %v1478_v27 }
 0x75a   :  { %2082 = vtanh.f32 %v2874_v28 }
 0x764   :  { %v2083_v30 = vpop.eup %2082 }
 0x765   :  { %v1482_v31 = vmul.f32 %v2083_v30, %v2081_v29 }
 0x767   :  { %v1494_v33 = vpack.c.bf16 %v1482_v31, %v1482_v31 }
 0x769   :  { %1528 = vmatmul.mubr.bf16.vlgmr.msra.gmra.mrb[44].mxu0 %v1494_v33  ;;  %1569 = vmatmul.mubr.bf16.vlgmr.msra.gmra.mrb[44].mxu1 %v1494_v33 }
 0x76a   :  { %1876 = vmatpush3.bf16.msra.mxu0 %v1964_v34  ;;  %1891 = vmatprep.mubr.msk.bf16.mxu0 %vm2217_vm1, %v2216_v35 }
 0x76b   :  { %1877 = vmatprep.subr.bf16.mxu0 %v2216_v35 }
 0x76e   :  { %1878 = vmatpush3.bf16.msra.mxu0 %v1965_v36 }
 0x76f   :  { %1879 = vmatprep.subr.bf16.mxu0 %v2216_v35 }
 0x772   :  { %1880 = vmatpush3.bf16.msra.mxu0 %v1966_v24 }
 0x773   :  { %1881 = vmatprep.subr.bf16.mxu0 %v2216_v35 }
 0x776   :  { %1882 = vmatpush3.bf16.msra.mxu0 %v1967_v26 }
 0x777   :  { %1883 = vmatprep.subr.bf16.mxu0 %v2216_v35 }
 0x77a   :  { %1884 = vmatpush3.bf16.msra.mxu0 %v1968_v2 }
 0x77b   :  { %1885 = vmatprep.subr.bf16.mxu0 %v2216_v35 }
 0x77e   :  { %1886 = vmatpush3.bf16.msra.mxu0 %v1969_v54 }
 0x77f   :  { %1887 = vmatprep.subr.bf16.mxu0 %v2216_v35 }
 0x782   :  { %1888 = vmatpush3.bf16.msra.mxu0 %v1970_v49 }
 0x783   :  { %1889 = vmatprep.subr.bf16.mxu0 %v2216_v35 }
 0x786   :  { %1890 = vmatpush3.bf16.msra.mxu0 %v1971_v14 }
 0x83c   :  { %v1529_v57 = vpop.f32.mrb[44].mxu0  ;;  %v1570_v32 = vpop.f32.mrb[44].mxu1 }
 0x83d   :  { %v1577_v8 = vadd.f32 %v1529_v57, %v2945_v45  ;;  %v1579_v9 = vadd.f32 %v1570_v32, %v2555_v1  ;;  %v1531_v41 = vpop.f32.mrb[45].mxu0  ;;  %v1572_v55 = vpop.f32.mrb[45].mxu1 }
 0x83e   :  { %v1578_v6 = vadd.f32 %v1531_v41, %v2946_v46  ;;  %v1580_v43 = vadd.f32 %v1572_v55, %v2558_v51  ;;  %v1533_v0 = vpop.f32.mrb[46].mxu0  ;;  %v1574_v4 = vpop.f32.mrb[46].mxu1 }
 0x83f   :  { %v1838_v42 = vmul.f32 -1.442695, %v1577_v8  ;;  %v1534_v37 = vpop.f32.mrb[47].mxu0  ;;  %v1575_v20 = vpop.f32.mrb[47].mxu1  ;;  %v1840_v21 = vmul.f32 -1.442695, %v1579_v9 }
 0x840   :  { %v1839_v38 = vmul.f32 -1.442695, %v1578_v6 }
 0x841   :  { %2084 = vpow2.f32 %v1838_v42 }
 0x842   :  { %2086 = vpow2.f32 %v1839_v38 }
 0x843   :  { %2088 = vtanh.f32 %v1580_v43 }
 0x844   :  { %2090 = vpow2.f32 %v1840_v21 }
 0x84b   :  { %v2085_v39 = vpop.eup %2084 }
 0x84c   :  { %v1590_v22 = vadd.f32 1.0, %v2085_v39  ;;  %v2087_v40 = vpop.eup %2086 }
 0x84d   :  { %v1591_v1 = vadd.f32 1.0, %v2087_v40  ;;  %v2089_v23 = vpop.eup %2088 }
 0x84e   :  { %2092 = vrcp.f32 %v1590_v22  ;;  %v2091_v48 = vpop.eup %2090 }
 0x84f   :  { %2094 = vrcp.f32 %v1591_v1  ;;  %v1592_v47 = vadd.f32 1.0, %v2091_v48 }
 0x851   :  { %2096 = vrcp.f32 %v1592_v47 }
 0x858   :  { %v2093_v51 = vpop.eup %2092 }
 0x859   :  { %v1601_v44 = vmul.f32 %v2093_v51, %v2089_v23  ;;  %v2095_v52 = vpop.eup %2094 }
 0x85a   :  { %v1600_v61 = vmul.f32 %v2095_v52, %v2874_v28 }
 0x85b   :  { %v2097_v59 = vpop.eup %2096 }
 0x85c   :  { %v1602_v62 = vadd.f32 %v1601_v44, %v1600_v61 }
 0x85e   :  { %2098 = vtanh.f32 %v1602_v62 }
 0x868   :  { %v2099_v58 = vpop.eup %2098 }
 0x869   :  { %v1604_v63 = vmul.f32 %v2099_v58, %v2097_v59 }
 0x86b   :  { %v1610_v10 = vpack.c.bf16 %v1604_v63, %v1604_v63 }
 0x86d   :  { %1892 = vmatmul.mubr.bf16.vlgmr.msra.gmra.mrb[48].mxu0 %v1610_v10 }
 0x940   :  { %v1716_v15 = vpop.f32.mrb[48].mxu0 }
 0x941   :  { %v1717_v16 = vadd.f32 %v1841_v13, %v1716_v15  ;;  %v1893_v17 = vpop.f32.mrb[49].mxu0 }
 0x942   :  { %v1719_v18 = vpop.f32.mrb[50].mxu0 }
 0x943   :  { %v1894_v19 = vpop.f32.mrb[51].mxu0  ;;  %v1725_v56 = vsel %vm1724_vm2, %v1717_v16, -1e+30 }
 0x944   :  { %1726 = vmax.xlane.f32.xlu0 %v1725_v56 }
 0x9d1   :  { %v1727_v50 = vpop.xlane.xlu0 %1726 }
 0x9d2   :  { %v1728_v60 = vsub.f32 %v1725_v56, %v1727_v50 }
 0x9d4   :  { %v1729_v7 = vmul.f32 1.442695, %v1728_v60 }
 0x9d6   :  { %2100 = vpow2.f32 %v1729_v7 }
 0x9e0   :  { %v2101_v5 = vpop.eup %2100 }
 0x9e1   :  { %1731 = vadd.xlane.f32.xlu0 %v2101_v5 }
 0xa6e   :  { %v1732_v3 = vpop.xlane.xlu0 %1731 }
 0xa6f   :  { %2102 = vlog2.f32 %v1732_v3 }
 0xa79   :  { %v2103_v25 = vpop.eup %2102 }
 0xa7a   :  { %v1734_v53 = vmul.f32 0.6931472, %v2103_v25 }
 0xa7c   :  { %v1735_v27 = vsub.f32 %v1728_v60, %v1734_v53 }
 0xa7e   :  { %1736 = vst [vmem:[#allocation10] sm:$0xff] %v1735_v27 }
 0xa7f   :  { %2191 = shalt.err (!%p2188_p6)
}
 0xa80   :  { %s2192_s20 = scalar_lea.hbm %s2904_s6, 128 }
 0xa81   :  { %p2193_p7 = scmp.ne.s32.totalorder %s2904_s6, %s2192_s20  ;;  %p2196_p8 = scmp.lt.u32.totalorder %s2192_s20, %s2904_s6 }
 0xa83   :  { %p2198_p9 = pnand %p2196_p8, %p2193_p7 }
 0xa85   :  { %2201 = shalt.err (!%p2198_p9)
}
 0xa86   :  { %1746 = dma.vmem_to_hbm [thread:$0]  %s1744_s17, 128, %s2904_s6, [#allocation7]  }
 0xa87   :  { %2206 = dma.done.wait [#allocation7], 128  }
 0xa88   :  { %2207 = vsyncadd [#allocation7], 4294967168 }
 0xa89   :  { %1750 = vsyncpa [#allocation6], 1 }
 0xa8a   :  { %1751 = vsyncpa [#allocation9], 1 }
 0xa8b   :  { %1752 = vsyncpa [#allocation7], 1 }

</bundles_post_ra>
